<compile_context>
chip_gen: v7x
topology: tpu7x:2x2x1
jax: 0.10.0
libtpu: 0.0.40
codegen_flags: <defaults>
</compile_context>

<pallas_src>
import functools
import math

import jax
import jax.numpy as jnp
from jax.experimental import pallas as pl
from jax.experimental.pallas import tpu as pltpu


# MXU feed dtype: bf16 operands + f32 accumulation (v5e/v6e/v7x MXUs are bf16-native).
MXU_DTYPE = jnp.bfloat16
# Inter-kernel activation slabs and weight matrices live in bf16 in HBM.
ACT_DTYPE = jnp.bfloat16
WEIGHT_DTYPE = jnp.bfloat16
NEG_BIAS = -1e9  # finite additive mask bias; bias add + softmax stay in f32


def _vmem_budget():
    """Generation-dependent scoped-VMEM budget (v5e/v6e: 128 MiB, v7x: 64 MiB)."""
    try:
        cap = pltpu.get_tpu_info().vmem_capacity_bytes
    except Exception:  # conservative fallback (v7x-sized)
        cap = 64 * 1024 * 1024
    return min(int(cap) * 3 // 4, 100 * 1024 * 1024)


VMEM_LIMIT = _vmem_budget()
_BIG_VMEM = VMEM_LIMIT >= 72 * 1024 * 1024     # true on v5e / v6e
DEF_TM = 512 if _BIG_VMEM else 256
DEF_TN = 1024 if _BIG_VMEM else 512
DEF_TK = 512
SUBLANE_GRANULE = 16                            # bf16 tiles pack (16, 128) per vreg


def _choose_tile(dim, target, granule):
    """Largest granule-multiple divisor of `dim` that is <= target, else full dim."""
    if dim <= target or dim % granule != 0:
        return dim
    t = (min(target, dim) // granule) * granule
    while dim % t != 0:
        t -= granule
    return t


# ---------------------------------------------------------------------------
# Tiled dense matmul (optionally fused activation) — bf16 in/out, f32 accumulate
# ---------------------------------------------------------------------------

def _matmul_kernel(x_ref, w_ref, b_ref, o_ref, acc_ref, *, activation):
    @pl.when(pl.program_id(2) == 0)
    def _():
        acc_ref[...] = jnp.zeros_like(acc_ref)

    acc_ref[...] += jnp.dot(x_ref[...].astype(MXU_DTYPE),
                            w_ref[...].astype(MXU_DTYPE),
                            preferred_element_type=jnp.float32)

    @pl.when(pl.program_id(2) == pl.num_programs(2) - 1)
    def _():
        y = acc_ref[...] + b_ref[...].astype(jnp.float32)
        if activation == "gelu":
            # TODO(synk): HF RoBERTa uses erf-based GELU; tanh approximation used for TPU lowering.
            y = jax.nn.gelu(y, approximate=True)
        elif activation == "tanh":
            y = jnp.tanh(y)
        o_ref[...] = y.astype(o_ref.dtype)


def dense(x, w, b, activation="none", *, tm=DEF_TM, tn=DEF_TN, tk=DEF_TK):
    """x:(M,K) @ w:(K,N) + b:(N,), tiled + pipelined, bf16 MXU feed, f32 accum."""
    M, K = x.shape
    N = w.shape[1]
    tm = _choose_tile(M, tm, SUBLANE_GRANULE)   # bf16 sublane granule
    tn = _choose_tile(N, tn, 128)               # lane granule
    tk = _choose_tile(K, tk, 128)
    grid = (M // tm, N // tn, K // tk)
    return pl.pallas_call(
        functools.partial(_matmul_kernel, activation=activation),
        out_shape=jax.ShapeDtypeStruct((M, N), ACT_DTYPE),
        grid_spec=pltpu.PrefetchScalarGridSpec(
            num_scalar_prefetch=0,
            grid=grid,
            in_specs=[
                pl.BlockSpec((tm, tk), lambda i, j, k: (i, k)),
                pl.BlockSpec((tk, tn), lambda i, j, k: (k, j)),
                pl.BlockSpec((1, tn), lambda i, j, k: (0, j)),
            ],
            out_specs=pl.BlockSpec((tm, tn), lambda i, j, k: (i, j)),
            scratch_shapes=[pltpu.VMEM((tm, tn), jnp.float32)],
        ),
        compiler_params=pltpu.CompilerParams(
            dimension_semantics=("parallel", "parallel", "arbitrary"),
            vmem_limit_bytes=VMEM_LIMIT,
        ),
    )(x, w, b.reshape(1, N))


# ---------------------------------------------------------------------------
# Dense matmul fused with residual add + LayerNorm (epilogue over full hidden N)
# ---------------------------------------------------------------------------

def _matmul_add_ln_kernel(x_ref, w_ref, b_ref, r_ref, g_ref, bb_ref, o_ref, acc_ref, *, eps):
    @pl.when(pl.program_id(1) == 0)
    def _():
        acc_ref[...] = jnp.zeros_like(acc_ref)

    acc_ref[...] += jnp.dot(x_ref[...].astype(MXU_DTYPE),
                            w_ref[...].astype(MXU_DTYPE),
                            preferred_element_type=jnp.float32)

    @pl.when(pl.program_id(1) == pl.num_programs(1) - 1)
    def _():
        y = acc_ref[...] + b_ref[...].astype(jnp.float32) + r_ref[...].astype(jnp.float32)
        mu = jnp.mean(y, axis=-1, keepdims=True)
        var = jnp.mean(jnp.square(y - mu), axis=-1, keepdims=True)
        y = (y - mu) * jax.lax.rsqrt(var + eps)
        o_ref[...] = (y * g_ref[...].astype(jnp.float32)
                      + bb_ref[...].astype(jnp.float32)).astype(o_ref.dtype)


def dense_add_layernorm(x, w, b, residual, gamma, beta, eps=1e-5, *, tm=DEF_TM, tk=DEF_TK):
    """LayerNorm(x @ w + b + residual); N (=hidden) kept whole so LN reduces in-tile."""
    M, K = x.shape
    N = w.shape[1]
    tm = _choose_tile(M, tm, SUBLANE_GRANULE)
    tk = _choose_tile(K, tk, 128)
    grid = (M // tm, K // tk)
    # TODO(synk): on v7x, residual/gamma/beta only needed on the last k step; a
    # shallower pipeline_mode on those streams would trim a few MiB of VMEM.
    return pl.pallas_call(
        functools.partial(_matmul_add_ln_kernel, eps=eps),
        out_shape=jax.ShapeDtypeStruct((M, N), ACT_DTYPE),
        grid_spec=pltpu.PrefetchScalarGridSpec(
            num_scalar_prefetch=0,
            grid=grid,
            in_specs=[
                pl.BlockSpec((tm, tk), lambda i, k: (i, k)),
                pl.BlockSpec((tk, N), lambda i, k: (k, 0)),
                pl.BlockSpec((1, N), lambda i, k: (0, 0)),
                pl.BlockSpec((tm, N), lambda i, k: (i, 0)),
                pl.BlockSpec((1, N), lambda i, k: (0, 0)),
                pl.BlockSpec((1, N), lambda i, k: (0, 0)),
            ],
            out_specs=pl.BlockSpec((tm, N), lambda i, k: (i, 0)),
            scratch_shapes=[pltpu.VMEM((tm, N), jnp.float32)],
        ),
        compiler_params=pltpu.CompilerParams(
            dimension_semantics=("parallel", "arbitrary"),
            vmem_limit_bytes=VMEM_LIMIT,
        ),
    )(x, w, b.reshape(1, N), residual, gamma.reshape(1, N), beta.reshape(1, N))


# ---------------------------------------------------------------------------
# Standalone LayerNorm (embedding LN) — HBM-bandwidth bound, big row tiles
# ---------------------------------------------------------------------------

def _ln_kernel(x_ref, g_ref, b_ref, o_ref, *, eps):
    x = x_ref[...].astype(jnp.float32)
    mu = jnp.mean(x, axis=-1, keepdims=True)
    var = jnp.mean(jnp.square(x - mu), axis=-1, keepdims=True)
    y = (x - mu) * jax.lax.rsqrt(var + eps)
    o_ref[...] = (y * g_ref[...].astype(jnp.float32)
                  + b_ref[...].astype(jnp.float32)).astype(o_ref.dtype)


def layernorm(x, gamma, beta, eps=1e-5, *, tm=1024):
    M, H = x.shape
    tm = _choose_tile(M, tm, SUBLANE_GRANULE)
    return pl.pallas_call(
        functools.partial(_ln_kernel, eps=eps),
        out_shape=jax.ShapeDtypeStruct((M, H), ACT_DTYPE),
        grid_spec=pltpu.PrefetchScalarGridSpec(
            num_scalar_prefetch=0,
            grid=(M // tm,),
            in_specs=[pl.BlockSpec((tm, H), lambda i: (i, 0)),
                      pl.BlockSpec((1, H), lambda i: (0, 0)),
                      pl.BlockSpec((1, H), lambda i: (0, 0))],
            out_specs=pl.BlockSpec((tm, H), lambda i: (i, 0)),
        ),
        compiler_params=pltpu.CompilerParams(
            dimension_semantics=("parallel",),
            vmem_limit_bytes=VMEM_LIMIT,
        ),
    )(x, gamma.reshape(1, H), beta.reshape(1, H))


# ---------------------------------------------------------------------------
# Multi-head self-attention: one grid step per batch element, all heads in-kernel,
# activations stay in (B, S, H) layout.  bf16 MXU feed, f32 softmax, (S, H) f32
# VMEM scratch accumulator -> single lane-dense output store.
# ---------------------------------------------------------------------------

def _attn_kernel(qkv_ref, bias_ref, o_ref, acc_ref, *, n_heads, head_dim, scale):
    H = n_heads * head_dim
    qkv = qkv_ref[0]                                    # (S, 3H) bf16
    bias = bias_ref[0].astype(jnp.float32)              # (1, S) additive, precomputed
    # TODO(synk): for >=128-wide MXU tiles, batch heads via a head-axis dot_general
    # (or a flash-style q-tile grid for long S on v7x); kept per-head for robust lowering.
    for h in range(n_heads):                            # static unrolled head loop
        lo = h * head_dim
        qh = qkv[:, lo:lo + head_dim].astype(MXU_DTYPE)
        kh = qkv[:, H + lo:H + lo + head_dim].astype(MXU_DTYPE)
        vh = qkv[:, 2 * H + lo:2 * H + lo + head_dim].astype(MXU_DTYPE)
        # contract head_dim of q and k directly (no materialized transpose); f32 accum
        s = jax.lax.dot_general(qh, kh, (((1,), (1,)), ((), ())),
                                preferred_element_type=jnp.float32) * scale
        s = s + bias
        s = s - jnp.max(s, axis=-1, keepdims=True)
        p = jnp.exp(s)
        p = p * pl.reciprocal(jnp.sum(p, axis=-1, keepdims=True), approx=True)
        acc_ref[:, lo:lo + head_dim] = jnp.dot(p.astype(MXU_DTYPE), vh,
                                               preferred_element_type=jnp.float32)
    # single lane-dense (S, H) store
    o_ref[0] = acc_ref[...].astype(o_ref.dtype)


def attention(qkv, bias, n_heads, head_dim):
    """qkv: (B, S, 3H) bf16; bias: (B, 1, S) f32 additive mask. Returns (B, S, H) bf16."""
    B, S, threeH = qkv.shape
    H = n_heads * head_dim
    return pl.pallas_call(
        functools.partial(_attn_kernel, n_heads=n_heads, head_dim=head_dim,
                          scale=1.0 / math.sqrt(head_dim)),
        out_shape=jax.ShapeDtypeStruct((B, S, H), ACT_DTYPE),
        grid=(B,),
        in_specs=[pl.BlockSpec((1, S, threeH), lambda b: (b, 0, 0)),
                  pl.BlockSpec((1, 1, S), lambda b: (b, 0, 0))],
        out_specs=pl.BlockSpec((1, S, H), lambda b: (b, 0, 0)),
        scratch_shapes=[pltpu.VMEM((S, H), jnp.float32)],
        compiler_params=pltpu.CompilerParams(
            dimension_semantics=("parallel",),
            vmem_limit_bytes=VMEM_LIMIT,
        ),
    )(qkv, bias)


# ---------------------------------------------------------------------------
# Fused pooler (tanh dense on CLS) + MC decoder — decoder as VPU row reduction
# ---------------------------------------------------------------------------

def _pool_decode_kernel(cls_ref, pw_ref, pb_ref, dw_ref, db_ref, o_ref):
    h = jnp.dot(cls_ref[...].astype(MXU_DTYPE), pw_ref[...].astype(MXU_DTYPE),
                preferred_element_type=jnp.float32) + pb_ref[...].astype(jnp.float32)
    h = jnp.tanh(h)
    # N=1 decoder as a VPU reduction instead of an N=1 MXU matmul
    logit = (jnp.sum(h * dw_ref[...].astype(jnp.float32), axis=-1, keepdims=True)
             + db_ref[...].astype(jnp.float32))
    o_ref[...] = logit.astype(o_ref.dtype)


def pool_and_decode(cls, pooler_w, pooler_b, decoder_w, decoder_b):
    B, H = cls.shape
    return pl.pallas_call(
        _pool_decode_kernel,
        out_shape=jax.ShapeDtypeStruct((B, 1), jnp.float32),
        compiler_params=pltpu.CompilerParams(vmem_limit_bytes=VMEM_LIMIT),
    )(cls, pooler_w, pooler_b.reshape(1, H), decoder_w.reshape(1, H),
      decoder_b.reshape(1, 1))


# ---------------------------------------------------------------------------
# Model (synthetic small RoBERTa-like config, deterministic weights)
# ---------------------------------------------------------------------------

def make_config():
    return dict(vocab_size=64, hidden=64, n_heads=4, head_dim=16,
                intermediate=128, n_layers=2, max_pos=64, pad_id=1,
                type_vocab=2, ln_eps=1e-5)


def init_params(key, cfg):
    H, I = cfg["hidden"], cfg["intermediate"]

    def nrm(k, shape):
        return (0.02 * jax.random.normal(k, shape, jnp.float32)).astype(WEIGHT_DTYPE)

    keys = iter(jax.random.split(key, 8 + 8 * cfg["n_layers"]))
    params = {
        "word_emb": 0.02 * jax.random.normal(next(keys), (cfg["vocab_size"], H), jnp.float32),
        "pos_emb": 0.02 * jax.random.normal(next(keys), (cfg["max_pos"], H), jnp.float32),
        "type_emb": 0.02 * jax.random.normal(next(keys), (cfg["type_vocab"], H), jnp.float32),
        "emb_ln_g": jnp.ones((H,), jnp.float32),
        "emb_ln_b": jnp.zeros((H,), jnp.float32),
        "pooler_w": nrm(next(keys), (H, H)),
        "pooler_b": jnp.zeros((H,), jnp.float32),
        "decoder_w": nrm(next(keys), (H, 1)),     # nn.Linear(sent_dim, 1)
        "decoder_b": jnp.zeros((1,), jnp.float32),
        "layers": [],
    }
    for _ in range(cfg["n_layers"]):
        params["layers"].append({
            # fused Q|K|V projection: (H, 3H)
            "w_qkv": nrm(next(keys), (H, 3 * H)), "b_qkv": jnp.zeros((3 * H,), jnp.float32),
            "wo": nrm(next(keys), (H, H)), "bo": jnp.zeros((H,), jnp.float32),
            "ln1_g": jnp.ones((H,), jnp.float32), "ln1_b": jnp.zeros((H,), jnp.float32),
            "wi": nrm(next(keys), (H, I)), "bi": jnp.zeros((I,), jnp.float32),
            "wf": nrm(next(keys), (I, H)), "bf": jnp.zeros((H,), jnp.float32),
            "ln2_g": jnp.ones((H,), jnp.float32), "ln2_b": jnp.zeros((H,), jnp.float32),
        })
    return params


def aristo_forward(params, input_ids, attention_mask, cfg, layer_id=-1):
    """AristoForMultipleChoice.forward: (bs, nc, S) token ids -> (bs, nc) logits."""
    bs, nc, S = input_ids.shape
    B = bs * nc
    H, nH, dh = cfg["hidden"], cfg["n_heads"], cfg["head_dim"]

    # flatten (bs, nc) -> batch, as in the PyTorch view()
    ids = input_ids.reshape(B, S)
    mask = attention_mask.reshape(B, S).astype(jnp.float32)

    # RoBERTa position ids: cumsum of non-pad mask, offset by padding_idx
    mask_i = mask.astype(jnp.int32)
    position_ids = jnp.cumsum(mask_i, axis=1) * mask_i + cfg["pad_id"]

    # embeddings (gather is glue; LayerNorm is a Pallas kernel). Activations -> bf16.
    emb = (params["word_emb"][ids]
           + params["pos_emb"][position_ids]
           + params["type_emb"][jnp.zeros_like(ids)])
    x = emb.reshape(B * S, H).astype(ACT_DTYPE)
    x = layernorm(x, params["emb_ln_g"], params["emb_ln_b"], cfg["ln_eps"])

    # additive attention-mask bias precomputed once (not per grid step in-kernel)
    bias3 = ((1.0 - mask) * NEG_BIAS).reshape(B, 1, S).astype(jnp.float32)

    # only materialize the hidden state actually selected by layer_id
    n_states = cfg["n_layers"] + 1
    lid = layer_id % n_states
    selected = x if lid == 0 else None

    for li, lp in enumerate(params["layers"]):
        # --- self attention (fused QKV projection; heads handled in-kernel) ---
        qkv = dense(x, lp["w_qkv"], lp["b_qkv"])                       # (B*S, 3H) bf16
        ctx = attention(qkv.reshape(B, S, 3 * H), bias3, nH, dh)       # (B, S, H) bf16
        ctx = ctx.reshape(B * S, H)
        # output projection fused with residual add + LayerNorm (dropout = identity)
        x = dense_add_layernorm(ctx, lp["wo"], lp["bo"], x,
                                lp["ln1_g"], lp["ln1_b"], cfg["ln_eps"])
        # --- feed forward ---
        h = dense(x, lp["wi"], lp["bi"], activation="gelu")
        # down projection fused with residual add + LayerNorm (dropout = identity)
        x = dense_add_layernorm(h, lp["wf"], lp["bf"], x,
                                lp["ln2_g"], lp["ln2_b"], cfg["ln_eps"])
        if li + 1 == lid:
            selected = x

    # hidden_states = all_hidden_states[layer_id]; pooler = tanh(W @ h[:,0] + b); decoder N=1
    hidden = selected
    cls = hidden.reshape(B, S, H)[:, 0, :]                             # (B, H)
    # self.dropout(sent_vecs) -> identity in eval mode; pooler+decoder fused in one kernel
    logits = pool_and_decode(cls, params["pooler_w"], params["pooler_b"],
                             params["decoder_w"], params["decoder_b"])  # (B, 1) f32
    return logits.reshape(bs, nc)


# ---------------------------------------------------------------------------

if __name__ == "__main__":
    cfg = make_config()
    key = jax.random.PRNGKey(0)
    pkey, ikey = jax.random.split(key)
    params = init_params(pkey, cfg)

    bs, nc, S = 2, 2, 8
    input_ids = jax.random.randint(ikey, (bs, nc, S), 2, cfg["vocab_size"], dtype=jnp.int32)
    attention_mask = jnp.ones((bs, nc, S), jnp.int32).at[:, :, -2:].set(0)
    input_ids = jnp.where(attention_mask == 1, input_ids, cfg["pad_id"])

    fwd = jax.jit(functools.partial(aristo_forward, cfg=cfg, layer_id=-1))
    logits = fwd(params, input_ids, attention_mask)
    jax.block_until_ready(logits)
    assert logits.shape == (bs, nc) and logits.dtype == jnp.float32
    assert bool(jnp.all(jnp.isfinite(logits)))
    print("KERNEL_OK")
</pallas_src>

<mosaic_0001>
module attributes {stable_mosaic.version = 11 : i64} {
  func.func @_matmul_kernel(%arg0: i32, %arg1: i32, %arg2: i32, %arg3: memref<32x64xbf16, #tpu.memory_space<vmem>>, %arg4: memref<64x192xbf16, #tpu.memory_space<vmem>>, %arg5: memref<1x192xf32, #tpu.memory_space<vmem>>, %arg6: memref<32x192xbf16, #tpu.memory_space<vmem>>, %arg7: memref<32x192xf32, #tpu.memory_space<vmem>>) attributes {dimension_semantics = [#tpu.dimension_semantics<parallel>, #tpu.dimension_semantics<parallel>, #tpu.dimension_semantics<arbitrary>], iteration_bounds = array<i64: 1, 1, 1>, scalar_prefetch = 0 : i64, scratch_operands = 1 : i64, tpu.core_type = #tpu.core_type<tc>, window_params = [{transform_indices = @transform_0, window_bounds = array<i64: 32, 64>}, {transform_indices = @transform_1, window_bounds = array<i64: 64, 192>}, {transform_indices = @transform_2, window_bounds = array<i64: 1, 192>}, {transform_indices = @transform_3, window_bounds = array<i64: 32, 192>}]} {
    %c0_i32 = arith.constant 0 : i32
    %0 = arith.cmpi eq, %arg2, %c0_i32 : i32
    %1 = arith.extui %0 : i1 to i32
    %c0_i32_0 = arith.constant 0 : i32
    %2 = arith.cmpi ne, %1, %c0_i32_0 : i32
    scf.if %2 {
      %cst_10 = arith.constant 0.000000e+00 : f32
      %12 = vector.broadcast %cst_10 : f32 to vector<32x192xf32>
      %c0_11 = arith.constant 0 : index
      %c0_12 = arith.constant 0 : index
      %13 = vector.load %arg7[%c0_11, %c0_12] : memref<32x192xf32, #tpu.memory_space<vmem>>, vector<32x192xf32>
      tpu.vector_store %arg7[%c0_11, %c0_12], %12 {strides = array<i32>} : memref<32x192xf32, #tpu.memory_space<vmem>>, vector<32x192xf32>,
    } else {
    }
    %c0 = arith.constant 0 : index
    %c0_1 = arith.constant 0 : index
    %3 = vector.load %arg7[%c0, %c0_1] : memref<32x192xf32, #tpu.memory_space<vmem>>, vector<32x192xf32>
    %c0_2 = arith.constant 0 : index
    %c0_3 = arith.constant 0 : index
    %4 = vector.load %arg3[%c0_2, %c0_3] : memref<32x64xbf16, #tpu.memory_space<vmem>>, vector<32x64xbf16>
    %c0_4 = arith.constant 0 : index
    %c0_5 = arith.constant 0 : index
    %5 = vector.load %arg4[%c0_4, %c0_5] : memref<64x192xbf16, #tpu.memory_space<vmem>>, vector<64x192xbf16>
    %cst = arith.constant dense<0.000000e+00> : vector<32x192xf32>
    %6 = tpu.matmul %4, %5, %cst {dimension_numbers = #tpu.dot_dimension_numbers<[1], [0], [0], [1], [0, 0, 1, 1], [], []>} : vector<32x64xbf16>, vector<64x192xbf16>, vector<32x192xf32> -> vector<32x192xf32>
    %7 = arith.addf %3, %6 : vector<32x192xf32>
    %c0_6 = arith.constant 0 : index
    %c0_7 = arith.constant 0 : index
    %8 = vector.load %arg7[%c0_6, %c0_7] : memref<32x192xf32, #tpu.memory_space<vmem>>, vector<32x192xf32>
    tpu.vector_store %arg7[%c0_6, %c0_7], %7 {strides = array<i32>} : memref<32x192xf32, #tpu.memory_space<vmem>>, vector<32x192xf32>,
    %c0_i32_8 = arith.constant 0 : i32
    %9 = arith.cmpi eq, %arg2, %c0_i32_8 : i32
    %10 = arith.extui %9 : i1 to i32
    %c0_i32_9 = arith.constant 0 : i32
    %11 = arith.cmpi ne, %10, %c0_i32_9 : i32
    scf.if %11 {
      %c0_10 = arith.constant 0 : index
      %c0_11 = arith.constant 0 : index
      %12 = vector.load %arg7[%c0_10, %c0_11] : memref<32x192xf32, #tpu.memory_space<vmem>>, vector<32x192xf32>
      %c0_12 = arith.constant 0 : index
      %c0_13 = arith.constant 0 : index
      %13 = vector.load %arg5[%c0_12, %c0_13] : memref<1x192xf32, #tpu.memory_space<vmem>>, vector<1x192xf32>
      %14 = vector.broadcast %13 : vector<1x192xf32> to vector<32x192xf32>
      %15 = arith.addf %12, %14 : vector<32x192xf32>
      %16 = arith.truncf %15 : vector<32x192xf32> to vector<32x192xbf16>
      %c0_14 = arith.constant 0 : index
      %c0_15 = arith.constant 0 : index
      %17 = vector.load %arg6[%c0_14, %c0_15] : memref<32x192xbf16, #tpu.memory_space<vmem>>, vector<32x192xbf16>
      tpu.vector_store %arg6[%c0_14, %c0_15], %16 {strides = array<i32>} : memref<32x192xbf16, #tpu.memory_space<vmem>>, vector<32x192xbf16>,
    } else {
    }
    return
  }
  func.func @transform_0(%arg0: i32, %arg1: i32, %arg2: i32) -> (i32, i32) {
    %c0_i32 = arith.constant 0 : i32
    return %arg0, %arg2 : i32, i32
  }
  func.func @transform_1(%arg0: i32, %arg1: i32, %arg2: i32) -> (i32, i32) {
    %c0_i32 = arith.constant 0 : i32
    return %arg2, %arg1 : i32, i32
  }
  func.func @transform_2(%arg0: i32, %arg1: i32, %arg2: i32) -> (i32, i32) {
    %c0_i32 = arith.constant 0 : i32
    %c0_i32_0 = arith.constant 0 : i32
    return %c0_i32, %arg1 : i32, i32
  }
  func.func @transform_3(%arg0: i32, %arg1: i32, %arg2: i32) -> (i32, i32) {
    %c0_i32 = arith.constant 0 : i32
    return %arg0, %arg1 : i32, i32
  }
}

module attributes {stable_mosaic.version = 11 : i64} {
  func.func @_ln_kernel(%arg0: i32, %arg1: memref<32x64xbf16, #tpu.memory_space<vmem>>, %arg2: memref<1x64xf32, #tpu.memory_space<vmem>>, %arg3: memref<1x64xf32, #tpu.memory_space<vmem>>, %arg4: memref<32x64xbf16, #tpu.memory_space<vmem>>) attributes {dimension_semantics = [#tpu.dimension_semantics<parallel>], iteration_bounds = array<i64: 1>, scalar_prefetch = 0 : i64, scratch_operands = 0 : i64, tpu.core_type = #tpu.core_type<tc>, window_params = [{transform_indices = @transform_0, window_bounds = array<i64: 32, 64>}, {pipeline_mode = #tpu.pipeline_mode<synchronous>, transform_indices = @transform_1, window_bounds = array<i64: 1, 64>}, {pipeline_mode = #tpu.pipeline_mode<synchronous>, transform_indices = @transform_2, window_bounds = array<i64: 1, 64>}, {transform_indices = @transform_3, window_bounds = array<i64: 32, 64>}]} {
    %c0 = arith.constant 0 : index
    %c0_0 = arith.constant 0 : index
    %0 = vector.load %arg1[%c0, %c0_0] : memref<32x64xbf16, #tpu.memory_space<vmem>>, vector<32x64xbf16>
    %1 = arith.extf %0 : vector<32x64xbf16> to vector<32x64xf32>
    %cst = arith.constant dense<0.000000e+00> : vector<32xf32>
    %2 = vector.multi_reduction <add>, %1, %cst [1] : vector<32x64xf32> to vector<32xf32>
    %3 = vector.shape_cast %2 : vector<32xf32> to vector<32x1xf32>
    %cst_1 = arith.constant 6.400000e+01 : f32
    %4 = vector.broadcast %cst_1 : f32 to vector<32x1xf32>
    %5 = arith.divf %3, %4 : vector<32x1xf32>
    %6 = vector.broadcast %5 : vector<32x1xf32> to vector<32x64xf32>
    %7 = arith.subf %1, %6 : vector<32x64xf32>
    %8 = arith.mulf %7, %7 : vector<32x64xf32>
    %cst_2 = arith.constant dense<0.000000e+00> : vector<32xf32>
    %9 = vector.multi_reduction <add>, %8, %cst_2 [1] : vector<32x64xf32> to vector<32xf32>
    %10 = vector.shape_cast %9 : vector<32xf32> to vector<32x1xf32>
    %cst_3 = arith.constant 6.400000e+01 : f32
    %11 = vector.broadcast %cst_3 : f32 to vector<32x1xf32>
    %12 = arith.divf %10, %11 : vector<32x1xf32>
    %13 = vector.broadcast %5 : vector<32x1xf32> to vector<32x64xf32>
    %14 = arith.subf %1, %13 : vector<32x64xf32>
    %cst_4 = arith.constant 9.99999974E-6 : f32
    %15 = vector.broadcast %cst_4 : f32 to vector<32x1xf32>
    %16 = arith.addf %12, %15 : vector<32x1xf32>
    %17 = math.rsqrt %16 : vector<32x1xf32>
    %18 = vector.broadcast %17 : vector<32x1xf32> to vector<32x64xf32>
    %19 = arith.mulf %14, %18 : vector<32x64xf32>
    %c0_5 = arith.constant 0 : index
    %c0_6 = arith.constant 0 : index
    %20 = vector.load %arg2[%c0_5, %c0_6] : memref<1x64xf32, #tpu.memory_space<vmem>>, vector<1x64xf32>
    %21 = vector.broadcast %20 : vector<1x64xf32> to vector<32x64xf32>
    %22 = arith.mulf %19, %21 : vector<32x64xf32>
    %c0_7 = arith.constant 0 : index
    %c0_8 = arith.constant 0 : index
    %23 = vector.load %arg3[%c0_7, %c0_8] : memref<1x64xf32, #tpu.memory_space<vmem>>, vector<1x64xf32>
    %24 = vector.broadcast %23 : vector<1x64xf32> to vector<32x64xf32>
    %25 = arith.addf %22, %24 : vector<32x64xf32>
    %26 = arith.truncf %25 : vector<32x64xf32> to vector<32x64xbf16>
    %c0_9 = arith.constant 0 : index
    %c0_10 = arith.constant 0 : index
    %27 = vector.load %arg4[%c0_9, %c0_10] : memref<32x64xbf16, #tpu.memory_space<vmem>>, vector<32x64xbf16>
    tpu.vector_store %arg4[%c0_9, %c0_10], %26 {strides = array<i32>} : memref<32x64xbf16, #tpu.memory_space<vmem>>, vector<32x64xbf16>,
    return
  }
  func.func @transform_0(%arg0: i32) -> (i32, i32) {
    %c0_i32 = arith.constant 0 : i32
    %c0_i32_0 = arith.constant 0 : i32
    return %arg0, %c0_i32 : i32, i32
  }
  func.func @transform_1(%arg0: i32) -> (i32, i32) {
    %c0_i32 = arith.constant 0 : i32
    %c0_i32_0 = arith.constant 0 : i32
    %c0_i32_1 = arith.constant 0 : i32
    return %c0_i32, %c0_i32_0 : i32, i32
  }
  func.func @transform_2(%arg0: i32) -> (i32, i32) {
    %c0_i32 = arith.constant 0 : i32
    %c0_i32_0 = arith.constant 0 : i32
    %c0_i32_1 = arith.constant 0 : i32
    return %c0_i32, %c0_i32_0 : i32, i32
  }
  func.func @transform_3(%arg0: i32) -> (i32, i32) {
    %c0_i32 = arith.constant 0 : i32
    %c0_i32_0 = arith.constant 0 : i32
    return %arg0, %c0_i32 : i32, i32
  }
}

module attributes {stable_mosaic.version = 11 : i64} {
  func.func @_attn_kernel(%arg0: i32, %arg1: memref<1x8x192xbf16, #tpu.memory_space<vmem>>, %arg2: memref<1x1x8xf32, #tpu.memory_space<vmem>>, %arg3: memref<1x8x64xbf16, #tpu.memory_space<vmem>>, %arg4: memref<8x64xf32, #tpu.memory_space<vmem>>) attributes {dimension_semantics = [#tpu.dimension_semantics<parallel>], iteration_bounds = array<i64: 4>, scalar_prefetch = 0 : i64, scratch_operands = 1 : i64, tpu.core_type = #tpu.core_type<tc>, window_params = [{transform_indices = @transform_0, window_bounds = array<i64: 1, 8, 192>}, {transform_indices = @transform_1, window_bounds = array<i64: 1, 1, 8>}, {transform_indices = @transform_2, window_bounds = array<i64: 1, 8, 64>}]} {
    %c0 = arith.constant 0 : index
    %c0_0 = arith.constant 0 : index
    %c0_1 = arith.constant 0 : index
    %0 = vector.load %arg1[%c0, %c0_0, %c0_1] : memref<1x8x192xbf16, #tpu.memory_space<vmem>>, vector<1x8x192xbf16>
    %1 = vector.shape_cast %0 : vector<1x8x192xbf16> to vector<8x192xbf16>
    %c0_2 = arith.constant 0 : index
    %c0_3 = arith.constant 0 : index
    %c0_4 = arith.constant 0 : index
    %2 = vector.load %arg2[%c0_2, %c0_3, %c0_4] : memref<1x1x8xf32, #tpu.memory_space<vmem>>, vector<1x1x8xf32>
    %3 = vector.shape_cast %2 : vector<1x1x8xf32> to vector<1x8xf32>
    %4 = vector.extract_strided_slice %1 {offsets = [0, 0], sizes = [8, 16], strides = [1, 1]} : vector<8x192xbf16> to vector<8x16xbf16>
    %5 = vector.extract_strided_slice %1 {offsets = [0, 64], sizes = [8, 16], strides = [1, 1]} : vector<8x192xbf16> to vector<8x16xbf16>
    %6 = vector.extract_strided_slice %1 {offsets = [0, 128], sizes = [8, 16], strides = [1, 1]} : vector<8x192xbf16> to vector<8x16xbf16>
    %cst = arith.constant dense<0.000000e+00> : vector<8x8xf32>
    %7 = tpu.matmul %4, %5, %cst {dimension_numbers = #tpu.dot_dimension_numbers<[1], [1], [0], [0], [0, 0, 1, 0], [], []>} : vector<8x16xbf16>, vector<8x16xbf16>, vector<8x8xf32> -> vector<8x8xf32>
    %cst_5 = arith.constant 2.500000e-01 : f32
    %8 = vector.broadcast %cst_5 : f32 to vector<8x8xf32>
    %9 = arith.mulf %7, %8 : vector<8x8xf32>
    %10 = vector.broadcast %3 : vector<1x8xf32> to vector<8x8xf32>
    %11 = arith.addf %9, %10 : vector<8x8xf32>
    %cst_6 = arith.constant dense<0xFF800000> : vector<8xf32>
    %12 = vector.multi_reduction <maximumf>, %11, %cst_6 [1] : vector<8x8xf32> to vector<8xf32>
    %13 = vector.shape_cast %12 : vector<8xf32> to vector<8x1xf32>
    %14 = vector.broadcast %13 : vector<8x1xf32> to vector<8x8xf32>
    %15 = arith.subf %11, %14 : vector<8x8xf32>
    %16 = math.exp %15 : vector<8x8xf32>
    %cst_7 = arith.constant dense<0.000000e+00> : vector<8xf32>
    %17 = vector.multi_reduction <add>, %16, %cst_7 [1] : vector<8x8xf32> to vector<8xf32>
    %18 = vector.shape_cast %17 : vector<8xf32> to vector<8x1xf32>
    %19 = tpu.reciprocal %18 {approx = true} : vector<8x1xf32> -> vector<8x1xf32>
    %20 = vector.broadcast %19 : vector<8x1xf32> to vector<8x8xf32>
    %21 = arith.mulf %16, %20 : vector<8x8xf32>
    %22 = arith.truncf %21 : vector<8x8xf32> to vector<8x8xbf16>
    %cst_8 = arith.constant dense<0.000000e+00> : vector<8x16xf32>
    %23 = tpu.matmul %22, %6, %cst_8 {dimension_numbers = #tpu.dot_dimension_numbers<[1], [0], [0], [1], [0, 0, 1, 1], [], []>} : vector<8x8xbf16>, vector<8x16xbf16>, vector<8x16xf32> -> vector<8x16xf32>
    %c0_9 = arith.constant 0 : index
    %c0_10 = arith.constant 0 : index
    %24 = vector.load %arg4[%c0_9, %c0_10] : memref<8x64xf32, #tpu.memory_space<vmem>>, vector<8x16xf32>
    tpu.vector_store %arg4[%c0_9, %c0_10], %23 {strides = array<i32>} : memref<8x64xf32, #tpu.memory_space<vmem>>, vector<8x16xf32>,
    %25 = vector.extract_strided_slice %1 {offsets = [0, 16], sizes = [8, 16], strides = [1, 1]} : vector<8x192xbf16> to vector<8x16xbf16>
    %26 = vector.extract_strided_slice %1 {offsets = [0, 80], sizes = [8, 16], strides = [1, 1]} : vector<8x192xbf16> to vector<8x16xbf16>
    %27 = vector.extract_strided_slice %1 {offsets = [0, 144], sizes = [8, 16], strides = [1, 1]} : vector<8x192xbf16> to vector<8x16xbf16>
    %cst_11 = arith.constant dense<0.000000e+00> : vector<8x8xf32>
    %28 = tpu.matmul %25, %26, %cst_11 {dimension_numbers = #tpu.dot_dimension_numbers<[1], [1], [0], [0], [0, 0, 1, 0], [], []>} : vector<8x16xbf16>, vector<8x16xbf16>, vector<8x8xf32> -> vector<8x8xf32>
    %cst_12 = arith.constant 2.500000e-01 : f32
    %29 = vector.broadcast %cst_12 : f32 to vector<8x8xf32>
    %30 = arith.mulf %28, %29 : vector<8x8xf32>
    %31 = vector.broadcast %3 : vector<1x8xf32> to vector<8x8xf32>
    %32 = arith.addf %30, %31 : vector<8x8xf32>
    %cst_13 = arith.constant dense<0xFF800000> : vector<8xf32>
    %33 = vector.multi_reduction <maximumf>, %32, %cst_13 [1] : vector<8x8xf32> to vector<8xf32>
    %34 = vector.shape_cast %33 : vector<8xf32> to vector<8x1xf32>
    %35 = vector.broadcast %34 : vector<8x1xf32> to vector<8x8xf32>
    %36 = arith.subf %32, %35 : vector<8x8xf32>
    %37 = math.exp %36 : vector<8x8xf32>
    %cst_14 = arith.constant dense<0.000000e+00> : vector<8xf32>
    %38 = vector.multi_reduction <add>, %37, %cst_14 [1] : vector<8x8xf32> to vector<8xf32>
    %39 = vector.shape_cast %38 : vector<8xf32> to vector<8x1xf32>
    %40 = tpu.reciprocal %39 {approx = true} : vector<8x1xf32> -> vector<8x1xf32>
    %41 = vector.broadcast %40 : vector<8x1xf32> to vector<8x8xf32>
    %42 = arith.mulf %37, %41 : vector<8x8xf32>
    %43 = arith.truncf %42 : vector<8x8xf32> to vector<8x8xbf16>
    %cst_15 = arith.constant dense<0.000000e+00> : vector<8x16xf32>
    %44 = tpu.matmul %43, %27, %cst_15 {dimension_numbers = #tpu.dot_dimension_numbers<[1], [0], [0], [1], [0, 0, 1, 1], [], []>} : vector<8x8xbf16>, vector<8x16xbf16>, vector<8x16xf32> -> vector<8x16xf32>
    %c0_16 = arith.constant 0 : index
    %c16 = arith.constant 16 : index
    %45 = vector.load %arg4[%c0_16, %c16] : memref<8x64xf32, #tpu.memory_space<vmem>>, vector<8x16xf32>
    tpu.vector_store %arg4[%c0_16, %c16], %44 {strides = array<i32>} : memref<8x64xf32, #tpu.memory_space<vmem>>, vector<8x16xf32>,
    %46 = vector.extract_strided_slice %1 {offsets = [0, 32], sizes = [8, 16], strides = [1, 1]} : vector<8x192xbf16> to vector<8x16xbf16>
    %47 = vector.extract_strided_slice %1 {offsets = [0, 96], sizes = [8, 16], strides = [1, 1]} : vector<8x192xbf16> to vector<8x16xbf16>
    %48 = vector.extract_strided_slice %1 {offsets = [0, 160], sizes = [8, 16], strides = [1, 1]} : vector<8x192xbf16> to vector<8x16xbf16>
    %cst_17 = arith.constant dense<0.000000e+00> : vector<8x8xf32>
    %49 = tpu.matmul %46, %47, %cst_17 {dimension_numbers = #tpu.dot_dimension_numbers<[1], [1], [0], [0], [0, 0, 1, 0], [], []>} : vector<8x16xbf16>, vector<8x16xbf16>, vector<8x8xf32> -> vector<8x8xf32>
    %cst_18 = arith.constant 2.500000e-01 : f32
    %50 = vector.broadcast %cst_18 : f32 to vector<8x8xf32>
    %51 = arith.mulf %49, %50 : vector<8x8xf32>
    %52 = vector.broadcast %3 : vector<1x8xf32> to vector<8x8xf32>
    %53 = arith.addf %51, %52 : vector<8x8xf32>
    %cst_19 = arith.constant dense<0xFF800000> : vector<8xf32>
    %54 = vector.multi_reduction <maximumf>, %53, %cst_19 [1] : vector<8x8xf32> to vector<8xf32>
    %55 = vector.shape_cast %54 : vector<8xf32> to vector<8x1xf32>
    %56 = vector.broadcast %55 : vector<8x1xf32> to vector<8x8xf32>
    %57 = arith.subf %53, %56 : vector<8x8xf32>
    %58 = math.exp %57 : vector<8x8xf32>
    %cst_20 = arith.constant dense<0.000000e+00> : vector<8xf32>
    %59 = vector.multi_reduction <add>, %58, %cst_20 [1] : vector<8x8xf32> to vector<8xf32>
    %60 = vector.shape_cast %59 : vector<8xf32> to vector<8x1xf32>
    %61 = tpu.reciprocal %60 {approx = true} : vector<8x1xf32> -> vector<8x1xf32>
    %62 = vector.broadcast %61 : vector<8x1xf32> to vector<8x8xf32>
    %63 = arith.mulf %58, %62 : vector<8x8xf32>
    %64 = arith.truncf %63 : vector<8x8xf32> to vector<8x8xbf16>
    %cst_21 = arith.constant dense<0.000000e+00> : vector<8x16xf32>
    %65 = tpu.matmul %64, %48, %cst_21 {dimension_numbers = #tpu.dot_dimension_numbers<[1], [0], [0], [1], [0, 0, 1, 1], [], []>} : vector<8x8xbf16>, vector<8x16xbf16>, vector<8x16xf32> -> vector<8x16xf32>
    %c0_22 = arith.constant 0 : index
    %c32 = arith.constant 32 : index
    %66 = vector.load %arg4[%c0_22, %c32] : memref<8x64xf32, #tpu.memory_space<vmem>>, vector<8x16xf32>
    tpu.vector_store %arg4[%c0_22, %c32], %65 {strides = array<i32>} : memref<8x64xf32, #tpu.memory_space<vmem>>, vector<8x16xf32>,
    %67 = vector.extract_strided_slice %1 {offsets = [0, 48], sizes = [8, 16], strides = [1, 1]} : vector<8x192xbf16> to vector<8x16xbf16>
    %68 = vector.extract_strided_slice %1 {offsets = [0, 112], sizes = [8, 16], strides = [1, 1]} : vector<8x192xbf16> to vector<8x16xbf16>
    %69 = vector.extract_strided_slice %1 {offsets = [0, 176], sizes = [8, 16], strides = [1, 1]} : vector<8x192xbf16> to vector<8x16xbf16>
    %cst_23 = arith.constant dense<0.000000e+00> : vector<8x8xf32>
    %70 = tpu.matmul %67, %68, %cst_23 {dimension_numbers = #tpu.dot_dimension_numbers<[1], [1], [0], [0], [0, 0, 1, 0], [], []>} : vector<8x16xbf16>, vector<8x16xbf16>, vector<8x8xf32> -> vector<8x8xf32>
    %cst_24 = arith.constant 2.500000e-01 : f32
    %71 = vector.broadcast %cst_24 : f32 to vector<8x8xf32>
    %72 = arith.mulf %70, %71 : vector<8x8xf32>
    %73 = vector.broadcast %3 : vector<1x8xf32> to vector<8x8xf32>
    %74 = arith.addf %72, %73 : vector<8x8xf32>
    %cst_25 = arith.constant dense<0xFF800000> : vector<8xf32>
    %75 = vector.multi_reduction <maximumf>, %74, %cst_25 [1] : vector<8x8xf32> to vector<8xf32>
    %76 = vector.shape_cast %75 : vector<8xf32> to vector<8x1xf32>
    %77 = vector.broadcast %76 : vector<8x1xf32> to vector<8x8xf32>
    %78 = arith.subf %74, %77 : vector<8x8xf32>
    %79 = math.exp %78 : vector<8x8xf32>
    %cst_26 = arith.constant dense<0.000000e+00> : vector<8xf32>
    %80 = vector.multi_reduction <add>, %79, %cst_26 [1] : vector<8x8xf32> to vector<8xf32>
    %81 = vector.shape_cast %80 : vector<8xf32> to vector<8x1xf32>
    %82 = tpu.reciprocal %81 {approx = true} : vector<8x1xf32> -> vector<8x1xf32>
    %83 = vector.broadcast %82 : vector<8x1xf32> to vector<8x8xf32>
    %84 = arith.mulf %79, %83 : vector<8x8xf32>
    %85 = arith.truncf %84 : vector<8x8xf32> to vector<8x8xbf16>
    %cst_27 = arith.constant dense<0.000000e+00> : vector<8x16xf32>
    %86 = tpu.matmul %85, %69, %cst_27 {dimension_numbers = #tpu.dot_dimension_numbers<[1], [0], [0], [1], [0, 0, 1, 1], [], []>} : vector<8x8xbf16>, vector<8x16xbf16>, vector<8x16xf32> -> vector<8x16xf32>
    %c0_28 = arith.constant 0 : index
    %c48 = arith.constant 48 : index
    %87 = vector.load %arg4[%c0_28, %c48] : memref<8x64xf32, #tpu.memory_space<vmem>>, vector<8x16xf32>
    tpu.vector_store %arg4[%c0_28, %c48], %86 {strides = array<i32>} : memref<8x64xf32, #tpu.memory_space<vmem>>, vector<8x16xf32>,
    %c0_29 = arith.constant 0 : index
    %c0_30 = arith.constant 0 : index
    %88 = vector.load %arg4[%c0_29, %c0_30] : memref<8x64xf32, #tpu.memory_space<vmem>>, vector<8x64xf32>
    %89 = arith.truncf %88 : vector<8x64xf32> to vector<8x64xbf16>
    %c0_31 = arith.constant 0 : index
    %c0_32 = arith.constant 0 : index
    %c0_33 = arith.constant 0 : index
    %90 = vector.load %arg3[%c0_31, %c0_32, %c0_33] : memref<1x8x64xbf16, #tpu.memory_space<vmem>>, vector<1x8x64xbf16>
    %91 = vector.shape_cast %90 : vector<1x8x64xbf16> to vector<8x64xbf16>
    %92 = vector.shape_cast %89 : vector<8x64xbf16> to vector<1x8x64xbf16>
    tpu.vector_store %arg3[%c0_31, %c0_32, %c0_33], %92 {strides = array<i32>} : memref<1x8x64xbf16, #tpu.memory_space<vmem>>, vector<1x8x64xbf16>,
    return
  }
  func.func @transform_0(%arg0: i32) -> (i32, i32, i32) {
    %c0_i32 = arith.constant 0 : i32
    %c0_i32_0 = arith.constant 0 : i32
    %c0_i32_1 = arith.constant 0 : i32
    return %arg0, %c0_i32, %c0_i32_0 : i32, i32, i32
  }
  func.func @transform_1(%arg0: i32) -> (i32, i32, i32) {
    %c0_i32 = arith.constant 0 : i32
    %c0_i32_0 = arith.constant 0 : i32
    %c0_i32_1 = arith.constant 0 : i32
    return %arg0, %c0_i32, %c0_i32_0 : i32, i32, i32
  }
  func.func @transform_2(%arg0: i32) -> (i32, i32, i32) {
    %c0_i32 = arith.constant 0 : i32
    %c0_i32_0 = arith.constant 0 : i32
    %c0_i32_1 = arith.constant 0 : i32
    return %arg0, %c0_i32, %c0_i32_0 : i32, i32, i32
  }
}

module attributes {stable_mosaic.version = 11 : i64} {
  func.func @_matmul_add_ln_kernel(%arg0: i32, %arg1: i32, %arg2: memref<32x64xbf16, #tpu.memory_space<vmem>>, %arg3: memref<64x64xbf16, #tpu.memory_space<vmem>>, %arg4: memref<1x64xf32, #tpu.memory_space<vmem>>, %arg5: memref<32x64xbf16, #tpu.memory_space<vmem>>, %arg6: memref<1x64xf32, #tpu.memory_space<vmem>>, %arg7: memref<1x64xf32, #tpu.memory_space<vmem>>, %arg8: memref<32x64xbf16, #tpu.memory_space<vmem>>, %arg9: memref<32x64xf32, #tpu.memory_space<vmem>>) attributes {dimension_semantics = [#tpu.dimension_semantics<parallel>, #tpu.dimension_semantics<arbitrary>], iteration_bounds = array<i64: 1, 1>, scalar_prefetch = 0 : i64, scratch_operands = 1 : i64, tpu.core_type = #tpu.core_type<tc>, window_params = [{transform_indices = @transform_0, window_bounds = array<i64: 32, 64>}, {transform_indices = @transform_1, window_bounds = array<i64: 64, 64>}, {pipeline_mode = #tpu.pipeline_mode<synchronous>, transform_indices = @transform_2, window_bounds = array<i64: 1, 64>}, {transform_indices = @transform_3, window_bounds = array<i64: 32, 64>}, {pipeline_mode = #tpu.pipeline_mode<synchronous>, transform_indices = @transform_4, window_bounds = array<i64: 1, 64>}, {pipeline_mode = #tpu.pipeline_mode<synchronous>, transform_indices = @transform_5, window_bounds = array<i64: 1, 64>}, {transform_indices = @transform_6, window_bounds = array<i64: 32, 64>}]} {
    %c0_i32 = arith.constant 0 : i32
    %0 = arith.cmpi eq, %arg1, %c0_i32 : i32
    %1 = arith.extui %0 : i1 to i32
    %c0_i32_0 = arith.constant 0 : i32
    %2 = arith.cmpi ne, %1, %c0_i32_0 : i32
    scf.if %2 {
      %cst_10 = arith.constant 0.000000e+00 : f32
      %12 = vector.broadcast %cst_10 : f32 to vector<32x64xf32>
      %c0_11 = arith.constant 0 : index
      %c0_12 = arith.constant 0 : index
      %13 = vector.load %arg9[%c0_11, %c0_12] : memref<32x64xf32, #tpu.memory_space<vmem>>, vector<32x64xf32>
      tpu.vector_store %arg9[%c0_11, %c0_12], %12 {strides = array<i32>} : memref<32x64xf32, #tpu.memory_space<vmem>>, vector<32x64xf32>,
    } else {
    }
    %c0 = arith.constant 0 : index
    %c0_1 = arith.constant 0 : index
    %3 = vector.load %arg9[%c0, %c0_1] : memref<32x64xf32, #tpu.memory_space<vmem>>, vector<32x64xf32>
    %c0_2 = arith.constant 0 : index
    %c0_3 = arith.constant 0 : index
    %4 = vector.load %arg2[%c0_2, %c0_3] : memref<32x64xbf16, #tpu.memory_space<vmem>>, vector<32x64xbf16>
    %c0_4 = arith.constant 0 : index
    %c0_5 = arith.constant 0 : index
    %5 = vector.load %arg3[%c0_4, %c0_5] : memref<64x64xbf16, #tpu.memory_space<vmem>>, vector<64x64xbf16>
    %cst = arith.constant dense<0.000000e+00> : vector<32x64xf32>
    %6 = tpu.matmul %4, %5, %cst {dimension_numbers = #tpu.dot_dimension_numbers<[1], [0], [0], [1], [0, 0, 1, 1], [], []>} : vector<32x64xbf16>, vector<64x64xbf16>, vector<32x64xf32> -> vector<32x64xf32>
    %7 = arith.addf %3, %6 : vector<32x64xf32>
    %c0_6 = arith.constant 0 : index
    %c0_7 = arith.constant 0 : index
    %8 = vector.load %arg9[%c0_6, %c0_7] : memref<32x64xf32, #tpu.memory_space<vmem>>, vector<32x64xf32>
    tpu.vector_store %arg9[%c0_6, %c0_7], %7 {strides = array<i32>} : memref<32x64xf32, #tpu.memory_space<vmem>>, vector<32x64xf32>,
    %c0_i32_8 = arith.constant 0 : i32
    %9 = arith.cmpi eq, %arg1, %c0_i32_8 : i32
    %10 = arith.extui %9 : i1 to i32
    %c0_i32_9 = arith.constant 0 : i32
    %11 = arith.cmpi ne, %10, %c0_i32_9 : i32
    scf.if %11 {
      %c0_10 = arith.constant 0 : index
      %c0_11 = arith.constant 0 : index
      %12 = vector.load %arg9[%c0_10, %c0_11] : memref<32x64xf32, #tpu.memory_space<vmem>>, vector<32x64xf32>
      %c0_12 = arith.constant 0 : index
      %c0_13 = arith.constant 0 : index
      %13 = vector.load %arg4[%c0_12, %c0_13] : memref<1x64xf32, #tpu.memory_space<vmem>>, vector<1x64xf32>
      %14 = vector.broadcast %13 : vector<1x64xf32> to vector<32x64xf32>
      %15 = arith.addf %12, %14 : vector<32x64xf32>
      %c0_14 = arith.constant 0 : index
      %c0_15 = arith.constant 0 : index
      %16 = vector.load %arg5[%c0_14, %c0_15] : memref<32x64xbf16, #tpu.memory_space<vmem>>, vector<32x64xbf16>
      %17 = arith.extf %16 : vector<32x64xbf16> to vector<32x64xf32>
      %18 = arith.addf %15, %17 : vector<32x64xf32>
      %cst_16 = arith.constant dense<0.000000e+00> : vector<32xf32>
      %19 = vector.multi_reduction <add>, %18, %cst_16 [1] : vector<32x64xf32> to vector<32xf32>
      %20 = vector.shape_cast %19 : vector<32xf32> to vector<32x1xf32>
      %cst_17 = arith.constant 6.400000e+01 : f32
      %21 = vector.broadcast %cst_17 : f32 to vector<32x1xf32>
      %22 = arith.divf %20, %21 : vector<32x1xf32>
      %23 = vector.broadcast %22 : vector<32x1xf32> to vector<32x64xf32>
      %24 = arith.subf %18, %23 : vector<32x64xf32>
      %25 = arith.mulf %24, %24 : vector<32x64xf32>
      %cst_18 = arith.constant dense<0.000000e+00> : vector<32xf32>
      %26 = vector.multi_reduction <add>, %25, %cst_18 [1] : vector<32x64xf32> to vector<32xf32>
      %27 = vector.shape_cast %26 : vector<32xf32> to vector<32x1xf32>
      %cst_19 = arith.constant 6.400000e+01 : f32
      %28 = vector.broadcast %cst_19 : f32 to vector<32x1xf32>
      %29 = arith.divf %27, %28 : vector<32x1xf32>
      %30 = vector.broadcast %22 : vector<32x1xf32> to vector<32x64xf32>
      %31 = arith.subf %18, %30 : vector<32x64xf32>
      %cst_20 = arith.constant 9.99999974E-6 : f32
      %32 = vector.broadcast %cst_20 : f32 to vector<32x1xf32>
      %33 = arith.addf %29, %32 : vector<32x1xf32>
      %34 = math.rsqrt %33 : vector<32x1xf32>
      %35 = vector.broadcast %34 : vector<32x1xf32> to vector<32x64xf32>
      %36 = arith.mulf %31, %35 : vector<32x64xf32>
      %c0_21 = arith.constant 0 : index
      %c0_22 = arith.constant 0 : index
      %37 = vector.load %arg6[%c0_21, %c0_22] : memref<1x64xf32, #tpu.memory_space<vmem>>, vector<1x64xf32>
      %38 = vector.broadcast %37 : vector<1x64xf32> to vector<32x64xf32>
      %39 = arith.mulf %36, %38 : vector<32x64xf32>
      %c0_23 = arith.constant 0 : index
      %c0_24 = arith.constant 0 : index
      %40 = vector.load %arg7[%c0_23, %c0_24] : memref<1x64xf32, #tpu.memory_space<vmem>>, vector<1x64xf32>
      %41 = vector.broadcast %40 : vector<1x64xf32> to vector<32x64xf32>
      %42 = arith.addf %39, %41 : vector<32x64xf32>
      %43 = arith.truncf %42 : vector<32x64xf32> to vector<32x64xbf16>
      %c0_25 = arith.constant 0 : index
      %c0_26 = arith.constant 0 : index
      %44 = vector.load %arg8[%c0_25, %c0_26] : memref<32x64xbf16, #tpu.memory_space<vmem>>, vector<32x64xbf16>
      tpu.vector_store %arg8[%c0_25, %c0_26], %43 {strides = array<i32>} : memref<32x64xbf16, #tpu.memory_space<vmem>>, vector<32x64xbf16>,
    } else {
    }
    return
  }
  func.func @transform_0(%arg0: i32, %arg1: i32) -> (i32, i32) {
    %c0_i32 = arith.constant 0 : i32
    return %arg0, %arg1 : i32, i32
  }
  func.func @transform_1(%arg0: i32, %arg1: i32) -> (i32, i32) {
    %c0_i32 = arith.constant 0 : i32
    %c0_i32_0 = arith.constant 0 : i32
    return %arg1, %c0_i32 : i32, i32
  }
  func.func @transform_2(%arg0: i32, %arg1: i32) -> (i32, i32) {
    %c0_i32 = arith.constant 0 : i32
    %c0_i32_0 = arith.constant 0 : i32
    %c0_i32_1 = arith.constant 0 : i32
    return %c0_i32, %c0_i32_0 : i32, i32
  }
  func.func @transform_3(%arg0: i32, %arg1: i32) -> (i32, i32) {
    %c0_i32 = arith.constant 0 : i32
    %c0_i32_0 = arith.constant 0 : i32
    return %arg0, %c0_i32 : i32, i32
  }
  func.func @transform_4(%arg0: i32, %arg1: i32) -> (i32, i32) {
    %c0_i32 = arith.constant 0 : i32
    %c0_i32_0 = arith.constant 0 : i32
    %c0_i32_1 = arith.constant 0 : i32
    return %c0_i32, %c0_i32_0 : i32, i32
  }
  func.func @transform_5(%arg0: i32, %arg1: i32) -> (i32, i32) {
    %c0_i32 = arith.constant 0 : i32
    %c0_i32_0 = arith.constant 0 : i32
    %c0_i32_1 = arith.constant 0 : i32
    return %c0_i32, %c0_i32_0 : i32, i32
  }
  func.func @transform_6(%arg0: i32, %arg1: i32) -> (i32, i32) {
    %c0_i32 = arith.constant 0 : i32
    %c0_i32_0 = arith.constant 0 : i32
    return %arg0, %c0_i32 : i32, i32
  }
}

module attributes {stable_mosaic.version = 11 : i64} {
  func.func @_matmul_kernel(%arg0: i32, %arg1: i32, %arg2: i32, %arg3: memref<32x64xbf16, #tpu.memory_space<vmem>>, %arg4: memref<64x128xbf16, #tpu.memory_space<vmem>>, %arg5: memref<1x128xf32, #tpu.memory_space<vmem>>, %arg6: memref<32x128xbf16, #tpu.memory_space<vmem>>, %arg7: memref<32x128xf32, #tpu.memory_space<vmem>>) attributes {dimension_semantics = [#tpu.dimension_semantics<parallel>, #tpu.dimension_semantics<parallel>, #tpu.dimension_semantics<arbitrary>], iteration_bounds = array<i64: 1, 1, 1>, scalar_prefetch = 0 : i64, scratch_operands = 1 : i64, tpu.core_type = #tpu.core_type<tc>, window_params = [{transform_indices = @transform_0, window_bounds = array<i64: 32, 64>}, {transform_indices = @transform_1, window_bounds = array<i64: 64, 128>}, {transform_indices = @transform_2, window_bounds = array<i64: 1, 128>}, {transform_indices = @transform_3, window_bounds = array<i64: 32, 128>}]} {
    %c0_i32 = arith.constant 0 : i32
    %0 = arith.cmpi eq, %arg2, %c0_i32 : i32
    %1 = arith.extui %0 : i1 to i32
    %c0_i32_0 = arith.constant 0 : i32
    %2 = arith.cmpi ne, %1, %c0_i32_0 : i32
    scf.if %2 {
      %cst_10 = arith.constant 0.000000e+00 : f32
      %12 = vector.broadcast %cst_10 : f32 to vector<32x128xf32>
      %c0_11 = arith.constant 0 : index
      %c0_12 = arith.constant 0 : index
      %13 = vector.load %arg7[%c0_11, %c0_12] : memref<32x128xf32, #tpu.memory_space<vmem>>, vector<32x128xf32>
      tpu.vector_store %arg7[%c0_11, %c0_12], %12 {strides = array<i32>} : memref<32x128xf32, #tpu.memory_space<vmem>>, vector<32x128xf32>,
    } else {
    }
    %c0 = arith.constant 0 : index
    %c0_1 = arith.constant 0 : index
    %3 = vector.load %arg7[%c0, %c0_1] : memref<32x128xf32, #tpu.memory_space<vmem>>, vector<32x128xf32>
    %c0_2 = arith.constant 0 : index
    %c0_3 = arith.constant 0 : index
    %4 = vector.load %arg3[%c0_2, %c0_3] : memref<32x64xbf16, #tpu.memory_space<vmem>>, vector<32x64xbf16>
    %c0_4 = arith.constant 0 : index
    %c0_5 = arith.constant 0 : index
    %5 = vector.load %arg4[%c0_4, %c0_5] : memref<64x128xbf16, #tpu.memory_space<vmem>>, vector<64x128xbf16>
    %cst = arith.constant dense<0.000000e+00> : vector<32x128xf32>
    %6 = tpu.matmul %4, %5, %cst {dimension_numbers = #tpu.dot_dimension_numbers<[1], [0], [0], [1], [0, 0, 1, 1], [], []>} : vector<32x64xbf16>, vector<64x128xbf16>, vector<32x128xf32> -> vector<32x128xf32>
    %7 = arith.addf %3, %6 : vector<32x128xf32>
    %c0_6 = arith.constant 0 : index
    %c0_7 = arith.constant 0 : index
    %8 = vector.load %arg7[%c0_6, %c0_7] : memref<32x128xf32, #tpu.memory_space<vmem>>, vector<32x128xf32>
    tpu.vector_store %arg7[%c0_6, %c0_7], %7 {strides = array<i32>} : memref<32x128xf32, #tpu.memory_space<vmem>>, vector<32x128xf32>,
    %c0_i32_8 = arith.constant 0 : i32
    %9 = arith.cmpi eq, %arg2, %c0_i32_8 : i32
    %10 = arith.extui %9 : i1 to i32
    %c0_i32_9 = arith.constant 0 : i32
    %11 = arith.cmpi ne, %10, %c0_i32_9 : i32
    scf.if %11 {
      %c0_10 = arith.constant 0 : index
      %c0_11 = arith.constant 0 : index
      %12 = vector.load %arg7[%c0_10, %c0_11] : memref<32x128xf32, #tpu.memory_space<vmem>>, vector<32x128xf32>
      %c0_12 = arith.constant 0 : index
      %c0_13 = arith.constant 0 : index
      %13 = vector.load %arg5[%c0_12, %c0_13] : memref<1x128xf32, #tpu.memory_space<vmem>>, vector<1x128xf32>
      %14 = vector.broadcast %13 : vector<1x128xf32> to vector<32x128xf32>
      %15 = arith.addf %12, %14 : vector<32x128xf32>
      %16 = arith.mulf %15, %15 : vector<32x128xf32>
      %17 = arith.mulf %15, %16 : vector<32x128xf32>
      %cst_14 = arith.constant 4.471500e-02 : f32
      %18 = vector.broadcast %cst_14 : f32 to vector<32x128xf32>
      %19 = arith.mulf %18, %17 : vector<32x128xf32>
      %20 = arith.addf %15, %19 : vector<32x128xf32>
      %cst_15 = arith.constant 0.797884583 : f32
      %21 = vector.broadcast %cst_15 : f32 to vector<32x128xf32>
      %22 = arith.mulf %21, %20 : vector<32x128xf32>
      %23 = math.tanh %22 : vector<32x128xf32>
      %cst_16 = arith.constant 1.000000e+00 : f32
      %24 = vector.broadcast %cst_16 : f32 to vector<32x128xf32>
      %25 = arith.addf %24, %23 : vector<32x128xf32>
      %cst_17 = arith.constant 5.000000e-01 : f32
      %26 = vector.broadcast %cst_17 : f32 to vector<32x128xf32>
      %27 = arith.mulf %26, %25 : vector<32x128xf32>
      %28 = arith.mulf %15, %27 : vector<32x128xf32>
      %29 = arith.truncf %28 : vector<32x128xf32> to vector<32x128xbf16>
      %c0_18 = arith.constant 0 : index
      %c0_19 = arith.constant 0 : index
      %30 = vector.load %arg6[%c0_18, %c0_19] : memref<32x128xbf16, #tpu.memory_space<vmem>>, vector<32x128xbf16>
      tpu.vector_store %arg6[%c0_18, %c0_19], %29 {strides = array<i32>} : memref<32x128xbf16, #tpu.memory_space<vmem>>, vector<32x128xbf16>,
    } else {
    }
    return
  }
  func.func @transform_0(%arg0: i32, %arg1: i32, %arg2: i32) -> (i32, i32) {
    %c0_i32 = arith.constant 0 : i32
    return %arg0, %arg2 : i32, i32
  }
  func.func @transform_1(%arg0: i32, %arg1: i32, %arg2: i32) -> (i32, i32) {
    %c0_i32 = arith.constant 0 : i32
    return %arg2, %arg1 : i32, i32
  }
  func.func @transform_2(%arg0: i32, %arg1: i32, %arg2: i32) -> (i32, i32) {
    %c0_i32 = arith.constant 0 : i32
    %c0_i32_0 = arith.constant 0 : i32
    return %c0_i32, %arg1 : i32, i32
  }
  func.func @transform_3(%arg0: i32, %arg1: i32, %arg2: i32) -> (i32, i32) {
    %c0_i32 = arith.constant 0 : i32
    return %arg0, %arg1 : i32, i32
  }
}

module attributes {stable_mosaic.version = 11 : i64} {
  func.func @_pool_decode_kernel(%arg0: memref<4x64xbf16, #tpu.memory_space<vmem>>, %arg1: memref<64x64xbf16, #tpu.memory_space<vmem>>, %arg2: memref<1x64xf32, #tpu.memory_space<vmem>>, %arg3: memref<1x64xbf16, #tpu.memory_space<vmem>>, %arg4: memref<1x1xf32, #tpu.memory_space<vmem>>, %arg5: memref<4x1xf32, #tpu.memory_space<vmem>>) attributes {dimension_semantics = [], scalar_prefetch = 0 : i64, scratch_operands = 0 : i64, tpu.core_type = #tpu.core_type<tc>} {
    %c0 = arith.constant 0 : index
    %c0_0 = arith.constant 0 : index
    %0 = vector.load %arg0[%c0, %c0_0] : memref<4x64xbf16, #tpu.memory_space<vmem>>, vector<4x64xbf16>
    %c0_1 = arith.constant 0 : index
    %c0_2 = arith.constant 0 : index
    %1 = vector.load %arg1[%c0_1, %c0_2] : memref<64x64xbf16, #tpu.memory_space<vmem>>, vector<64x64xbf16>
    %cst = arith.constant dense<0.000000e+00> : vector<4x64xf32>
    %2 = tpu.matmul %0, %1, %cst {dimension_numbers = #tpu.dot_dimension_numbers<[1], [0], [0], [1], [0, 0, 1, 1], [], []>} : vector<4x64xbf16>, vector<64x64xbf16>, vector<4x64xf32> -> vector<4x64xf32>
    %c0_3 = arith.constant 0 : index
    %c0_4 = arith.constant 0 : index
    %3 = vector.load %arg2[%c0_3, %c0_4] : memref<1x64xf32, #tpu.memory_space<vmem>>, vector<1x64xf32>
    %4 = vector.broadcast %3 : vector<1x64xf32> to vector<4x64xf32>
    %5 = arith.addf %2, %4 : vector<4x64xf32>
    %6 = math.tanh %5 : vector<4x64xf32>
    %c0_5 = arith.constant 0 : index
    %c0_6 = arith.constant 0 : index
    %7 = vector.load %arg3[%c0_5, %c0_6] : memref<1x64xbf16, #tpu.memory_space<vmem>>, vector<1x64xbf16>
    %8 = arith.extf %7 : vector<1x64xbf16> to vector<1x64xf32>
    %9 = vector.broadcast %8 : vector<1x64xf32> to vector<4x64xf32>
    %10 = arith.mulf %6, %9 : vector<4x64xf32>
    %cst_7 = arith.constant dense<0.000000e+00> : vector<4xf32>
    %11 = vector.multi_reduction <add>, %10, %cst_7 [1] : vector<4x64xf32> to vector<4xf32>
    %12 = vector.shape_cast %11 : vector<4xf32> to vector<4x1xf32>
    %c0_8 = arith.constant 0 : index
    %c0_9 = arith.constant 0 : index
    %13 = vector.load %arg4[%c0_8, %c0_9] : memref<1x1xf32, #tpu.memory_space<vmem>>, vector<1x1xf32>
    %14 = vector.broadcast %13 : vector<1x1xf32> to vector<4x1xf32>
    %15 = arith.addf %12, %14 : vector<4x1xf32>
    %c0_10 = arith.constant 0 : index
    %c0_11 = arith.constant 0 : index
    %16 = vector.load %arg5[%c0_10, %c0_11] : memref<4x1xf32, #tpu.memory_space<vmem>>, vector<4x1xf32>
    tpu.vector_store %arg5[%c0_10, %c0_11], %15 {strides = array<i32>} : memref<4x1xf32, #tpu.memory_space<vmem>>, vector<4x1xf32>,
    return
  }
}

module attributes {stable_mosaic.version = 11 : i64} {
  func.func @_matmul_add_ln_kernel(%arg0: i32, %arg1: i32, %arg2: memref<32x128xbf16, #tpu.memory_space<vmem>>, %arg3: memref<128x64xbf16, #tpu.memory_space<vmem>>, %arg4: memref<1x64xf32, #tpu.memory_space<vmem>>, %arg5: memref<32x64xbf16, #tpu.memory_space<vmem>>, %arg6: memref<1x64xf32, #tpu.memory_space<vmem>>, %arg7: memref<1x64xf32, #tpu.memory_space<vmem>>, %arg8: memref<32x64xbf16, #tpu.memory_space<vmem>>, %arg9: memref<32x64xf32, #tpu.memory_space<vmem>>) attributes {dimension_semantics = [#tpu.dimension_semantics<parallel>, #tpu.dimension_semantics<arbitrary>], iteration_bounds = array<i64: 1, 1>, scalar_prefetch = 0 : i64, scratch_operands = 1 : i64, tpu.core_type = #tpu.core_type<tc>, window_params = [{transform_indices = @transform_0, window_bounds = array<i64: 32, 128>}, {transform_indices = @transform_1, window_bounds = array<i64: 128, 64>}, {pipeline_mode = #tpu.pipeline_mode<synchronous>, transform_indices = @transform_2, window_bounds = array<i64: 1, 64>}, {transform_indices = @transform_3, window_bounds = array<i64: 32, 64>}, {pipeline_mode = #tpu.pipeline_mode<synchronous>, transform_indices = @transform_4, window_bounds = array<i64: 1, 64>}, {pipeline_mode = #tpu.pipeline_mode<synchronous>, transform_indices = @transform_5, window_bounds = array<i64: 1, 64>}, {transform_indices = @transform_6, window_bounds = array<i64: 32, 64>}]} {
    %c0_i32 = arith.constant 0 : i32
    %0 = arith.cmpi eq, %arg1, %c0_i32 : i32
    %1 = arith.extui %0 : i1 to i32
    %c0_i32_0 = arith.constant 0 : i32
    %2 = arith.cmpi ne, %1, %c0_i32_0 : i32
    scf.if %2 {
      %cst_10 = arith.constant 0.000000e+00 : f32
      %12 = vector.broadcast %cst_10 : f32 to vector<32x64xf32>
      %c0_11 = arith.constant 0 : index
      %c0_12 = arith.constant 0 : index
      %13 = vector.load %arg9[%c0_11, %c0_12] : memref<32x64xf32, #tpu.memory_space<vmem>>, vector<32x64xf32>
      tpu.vector_store %arg9[%c0_11, %c0_12], %12 {strides = array<i32>} : memref<32x64xf32, #tpu.memory_space<vmem>>, vector<32x64xf32>,
    } else {
    }
    %c0 = arith.constant 0 : index
    %c0_1 = arith.constant 0 : index
    %3 = vector.load %arg9[%c0, %c0_1] : memref<32x64xf32, #tpu.memory_space<vmem>>, vector<32x64xf32>
    %c0_2 = arith.constant 0 : index
    %c0_3 = arith.constant 0 : index
    %4 = vector.load %arg2[%c0_2, %c0_3] : memref<32x128xbf16, #tpu.memory_space<vmem>>, vector<32x128xbf16>
    %c0_4 = arith.constant 0 : index
    %c0_5 = arith.constant 0 : index
    %5 = vector.load %arg3[%c0_4, %c0_5] : memref<128x64xbf16, #tpu.memory_space<vmem>>, vector<128x64xbf16>
    %cst = arith.constant dense<0.000000e+00> : vector<32x64xf32>
    %6 = tpu.matmul %4, %5, %cst {dimension_numbers = #tpu.dot_dimension_numbers<[1], [0], [0], [1], [0, 0, 1, 1], [], []>} : vector<32x128xbf16>, vector<128x64xbf16>, vector<32x64xf32> -> vector<32x64xf32>
    %7 = arith.addf %3, %6 : vector<32x64xf32>
    %c0_6 = arith.constant 0 : index
    %c0_7 = arith.constant 0 : index
    %8 = vector.load %arg9[%c0_6, %c0_7] : memref<32x64xf32, #tpu.memory_space<vmem>>, vector<32x64xf32>
    tpu.vector_store %arg9[%c0_6, %c0_7], %7 {strides = array<i32>} : memref<32x64xf32, #tpu.memory_space<vmem>>, vector<32x64xf32>,
    %c0_i32_8 = arith.constant 0 : i32
    %9 = arith.cmpi eq, %arg1, %c0_i32_8 : i32
    %10 = arith.extui %9 : i1 to i32
    %c0_i32_9 = arith.constant 0 : i32
    %11 = arith.cmpi ne, %10, %c0_i32_9 : i32
    scf.if %11 {
      %c0_10 = arith.constant 0 : index
      %c0_11 = arith.constant 0 : index
      %12 = vector.load %arg9[%c0_10, %c0_11] : memref<32x64xf32, #tpu.memory_space<vmem>>, vector<32x64xf32>
      %c0_12 = arith.constant 0 : index
      %c0_13 = arith.constant 0 : index
      %13 = vector.load %arg4[%c0_12, %c0_13] : memref<1x64xf32, #tpu.memory_space<vmem>>, vector<1x64xf32>
      %14 = vector.broadcast %13 : vector<1x64xf32> to vector<32x64xf32>
      %15 = arith.addf %12, %14 : vector<32x64xf32>
      %c0_14 = arith.constant 0 : index
      %c0_15 = arith.constant 0 : index
      %16 = vector.load %arg5[%c0_14, %c0_15] : memref<32x64xbf16, #tpu.memory_space<vmem>>, vector<32x64xbf16>
      %17 = arith.extf %16 : vector<32x64xbf16> to vector<32x64xf32>
      %18 = arith.addf %15, %17 : vector<32x64xf32>
      %cst_16 = arith.constant dense<0.000000e+00> : vector<32xf32>
      %19 = vector.multi_reduction <add>, %18, %cst_16 [1] : vector<32x64xf32> to vector<32xf32>
      %20 = vector.shape_cast %19 : vector<32xf32> to vector<32x1xf32>
      %cst_17 = arith.constant 6.400000e+01 : f32
      %21 = vector.broadcast %cst_17 : f32 to vector<32x1xf32>
      %22 = arith.divf %20, %21 : vector<32x1xf32>
      %23 = vector.broadcast %22 : vector<32x1xf32> to vector<32x64xf32>
      %24 = arith.subf %18, %23 : vector<32x64xf32>
      %25 = arith.mulf %24, %24 : vector<32x64xf32>
      %cst_18 = arith.constant dense<0.000000e+00> : vector<32xf32>
      %26 = vector.multi_reduction <add>, %25, %cst_18 [1] : vector<32x64xf32> to vector<32xf32>
      %27 = vector.shape_cast %26 : vector<32xf32> to vector<32x1xf32>
      %cst_19 = arith.constant 6.400000e+01 : f32
      %28 = vector.broadcast %cst_19 : f32 to vector<32x1xf32>
      %29 = arith.divf %27, %28 : vector<32x1xf32>
      %30 = vector.broadcast %22 : vector<32x1xf32> to vector<32x64xf32>
      %31 = arith.subf %18, %30 : vector<32x64xf32>
      %cst_20 = arith.constant 9.99999974E-6 : f32
      %32 = vector.broadcast %cst_20 : f32 to vector<32x1xf32>
      %33 = arith.addf %29, %32 : vector<32x1xf32>
      %34 = math.rsqrt %33 : vector<32x1xf32>
      %35 = vector.broadcast %34 : vector<32x1xf32> to vector<32x64xf32>
      %36 = arith.mulf %31, %35 : vector<32x64xf32>
      %c0_21 = arith.constant 0 : index
      %c0_22 = arith.constant 0 : index
      %37 = vector.load %arg6[%c0_21, %c0_22] : memref<1x64xf32, #tpu.memory_space<vmem>>, vector<1x64xf32>
      %38 = vector.broadcast %37 : vector<1x64xf32> to vector<32x64xf32>
      %39 = arith.mulf %36, %38 : vector<32x64xf32>
      %c0_23 = arith.constant 0 : index
      %c0_24 = arith.constant 0 : index
      %40 = vector.load %arg7[%c0_23, %c0_24] : memref<1x64xf32, #tpu.memory_space<vmem>>, vector<1x64xf32>
      %41 = vector.broadcast %40 : vector<1x64xf32> to vector<32x64xf32>
      %42 = arith.addf %39, %41 : vector<32x64xf32>
      %43 = arith.truncf %42 : vector<32x64xf32> to vector<32x64xbf16>
      %c0_25 = arith.constant 0 : index
      %c0_26 = arith.constant 0 : index
      %44 = vector.load %arg8[%c0_25, %c0_26] : memref<32x64xbf16, #tpu.memory_space<vmem>>, vector<32x64xbf16>
      tpu.vector_store %arg8[%c0_25, %c0_26], %43 {strides = array<i32>} : memref<32x64xbf16, #tpu.memory_space<vmem>>, vector<32x64xbf16>,
    } else {
    }
    return
  }
  func.func @transform_0(%arg0: i32, %arg1: i32) -> (i32, i32) {
    %c0_i32 = arith.constant 0 : i32
    return %arg0, %arg1 : i32, i32
  }
  func.func @transform_1(%arg0: i32, %arg1: i32) -> (i32, i32) {
    %c0_i32 = arith.constant 0 : i32
    %c0_i32_0 = arith.constant 0 : i32
    return %arg1, %c0_i32 : i32, i32
  }
  func.func @transform_2(%arg0: i32, %arg1: i32) -> (i32, i32) {
    %c0_i32 = arith.constant 0 : i32
    %c0_i32_0 = arith.constant 0 : i32
    %c0_i32_1 = arith.constant 0 : i32
    return %c0_i32, %c0_i32_0 : i32, i32
  }
  func.func @transform_3(%arg0: i32, %arg1: i32) -> (i32, i32) {
    %c0_i32 = arith.constant 0 : i32
    %c0_i32_0 = arith.constant 0 : i32
    return %arg0, %c0_i32 : i32, i32
  }
  func.func @transform_4(%arg0: i32, %arg1: i32) -> (i32, i32) {
    %c0_i32 = arith.constant 0 : i32
    %c0_i32_0 = arith.constant 0 : i32
    %c0_i32_1 = arith.constant 0 : i32
    return %c0_i32, %c0_i32_0 : i32, i32
  }
  func.func @transform_5(%arg0: i32, %arg1: i32) -> (i32, i32) {
    %c0_i32 = arith.constant 0 : i32
    %c0_i32_0 = arith.constant 0 : i32
    %c0_i32_1 = arith.constant 0 : i32
    return %c0_i32, %c0_i32_0 : i32, i32
  }
  func.func @transform_6(%arg0: i32, %arg1: i32) -> (i32, i32) {
    %c0_i32 = arith.constant 0 : i32
    %c0_i32_0 = arith.constant 0 : i32
    return %arg0, %c0_i32 : i32, i32
  }
}

</mosaic_0001>

<bundles_post_ra>
// kernel: aristo_forward.12
= control target key start
LH: loop header
LB: loop body
LE: loop exit
PB: predicated region body
PF: predicated region fallthrough
CT: control target
= control target key end

     0   :  { %vm22_vm0 = vcmask 523264   ;;  %vm114_vm1 = vcmask 519168   ;;  %s206_s0 = inlined_call_operand.vmem [shape: bf16[32,64], index: 0, kind: input, shape index: {}]   ;;  %s207_s1 = inlined_call_operand.vmem [shape: f32[1,64], index: 1, kind: input, shape index: {}]   ;;  %s208_s2 = inlined_call_operand.vmem [shape: f32[1,64], index: 2, kind: input, shape index: {}]   ;;  %s209_s3 = inlined_call_operand.vmem [shape: bf16[32,64], index: 3, kind: output, shape index: {}]  }
   0x1   :  { %v134_v0 = vld [vmem:[%s206_s0] sm:$0xff]   ;;  %v141_v1 = vld [vmem:[%s206_s0 + $0x8] sm:$0xff]  }
   0x2   :  { %v135_v2 = vunpack.c.l.bf16 %v134_v0  ;;  %v139_v3 = vunpack.c.l.bf16 %v141_v1  ;;  %v136_v4 = vunpack.c.h.bf16 %v134_v0  ;;  %v140_v5 = vunpack.c.h.bf16 %v141_v1  ;;  %v123_v43 = vld [vmem:[%s207_s1] ss:$0 sm:$0xff] }
   0x3   :  { %v124_v45 = vld [vmem:[%s208_s2] ss:$0 sm:$0xff] }
   0x4   :  { %v23_v6 = vsel %vm22_vm0, %v135_v2, 0.0  ;;  %v29_v7 = vsel %vm22_vm0, %v139_v3, 0.0  ;;  %v26_v8 = vsel %vm22_vm0, %v136_v4, 0.0  ;;  %v32_v9 = vsel %vm22_vm0, %v140_v5, 0.0 }
   0x5   :  { %24 = vadd.xlane.f32.xlu0 %v23_v6  ;;  %30 = vadd.xlane.f32.xlu1 %v29_v7 }
   0x9   :  { %27 = vadd.xlane.f32.xlu0 %v26_v8  ;;  %33 = vadd.xlane.f32.xlu1 %v32_v9 }
  0x92   :  { %v25_v10 = vpop.xlane.xlu0 %24  ;;  %v31_v11 = vpop.xlane.xlu1 %30 }
  0x93   :  { %v36_v12 = vmul.f32 0.015625, %v25_v10  ;;  %v38_v13 = vmul.f32 0.015625, %v31_v11 }
  0x95   :  { %v40_v14 = vsub.f32 %v135_v2, %v36_v12  ;;  %v42_v15 = vsub.f32 %v139_v3, %v38_v13 }
  0x96   :  { %v28_v16 = vpop.xlane.xlu0 %27  ;;  %v34_v17 = vpop.xlane.xlu1 %33 }
  0x97   :  { %v37_v18 = vmul.f32 0.015625, %v28_v16  ;;  %v39_v19 = vmul.f32 0.015625, %v34_v17  ;;  %v44_v20 = vmul.f32 %v40_v14, %v40_v14  ;;  %v46_v21 = vmul.f32 %v42_v15, %v42_v15 }
  0x99   :  { %v41_v22 = vsub.f32 %v136_v4, %v37_v18  ;;  %v43_v23 = vsub.f32 %v140_v5, %v39_v19  ;;  %v48_v24 = vsel %vm22_vm0, %v44_v20, 0.0  ;;  %v54_v25 = vsel %vm22_vm0, %v46_v21, 0.0 }
  0x9a   :  { %49 = vadd.xlane.f32.xlu0 %v48_v24 }
  0x9b   :  { %v45_v26 = vmul.f32 %v41_v22, %v41_v22  ;;  %v47_v27 = vmul.f32 %v43_v23, %v43_v23 }
  0x9d   :  { %v51_v28 = vsel %vm22_vm0, %v45_v26, 0.0  ;;  %v57_v29 = vsel %vm22_vm0, %v47_v27, 0.0 }
  0x9e   :  { %55 = vadd.xlane.f32.xlu0 %v54_v25  ;;  %52 = vadd.xlane.f32.xlu1 %v51_v28 }
  0xa2   :  { %58 = vadd.xlane.f32.xlu1 %v57_v29 }
 0x127   :  { %v50_v30 = vpop.xlane.xlu0 %49 }
 0x128   :  { %v60_v31 = vmul.f32 0.015625, %v50_v30 }
 0x12a   :  { %v64_v32 = vadd.f32 1e-05, %v60_v31 }
 0x12b   :  { %v53_v33 = vpop.xlane.xlu1 %52  ;;  %v56_v34 = vpop.xlane.xlu0 %55 }
 0x12c   :  { %142 = vrsqrt.f32 %v64_v32  ;;  %v61_v35 = vmul.f32 0.015625, %v53_v33  ;;  %v62_v36 = vmul.f32 0.015625, %v56_v34 }
 0x12e   :  { %v65_v37 = vadd.f32 1e-05, %v61_v35  ;;  %v66_v38 = vadd.f32 1e-05, %v62_v36 }
 0x12f   :  { %v59_v39 = vpop.xlane.xlu1 %58 }
 0x130   :  { %144 = vrsqrt.f32 %v65_v37  ;;  %v63_v40 = vmul.f32 0.015625, %v59_v39 }
 0x131   :  { %146 = vrsqrt.f32 %v66_v38 }
 0x132   :  { %v67_v41 = vadd.f32 1e-05, %v63_v40 }
 0x134   :  { %148 = vrsqrt.f32 %v67_v41 }
 0x136   :  { %v143_v42 = vpop.eup %142 }
 0x137   :  { %v72_v44 = vmul.f32 %v143_v42, %v40_v14 }
 0x139   :  { %v83_v46 = vmul.f32 %v123_v43, %v72_v44 }
 0x13a   :  { %v145_v47 = vpop.eup %144 }
 0x13b   :  { %v147_v48 = vpop.eup %146  ;;  %v94_v49 = vadd.f32 %v124_v45, %v83_v46  ;;  %v73_v50 = vmul.f32 %v145_v47, %v41_v22 }
 0x13c   :  { %v74_v51 = vmul.f32 %v147_v48, %v42_v15 }
 0x13d   :  { %v129_v52 = vpack.c.bf16 %v94_v49, %v94_v49  ;;  %v84_v53 = vmul.f32 %v123_v43, %v73_v50 }
 0x13e   :  { %v149_v54 = vpop.eup %148  ;;  %v85_v55 = vmul.f32 %v123_v43, %v74_v51 }
 0x13f   :  { %115 = vst.msk [vmem:[%s209_s3] sm:$0xf] %vm114_vm1, %v129_v52  ;;  %v95_v56 = vadd.f32 %v124_v45, %v84_v53  ;;  %v75_v57 = vmul.f32 %v149_v54, %v43_v23 }
 0x140   :  { %v96_v58 = vadd.f32 %v124_v45, %v85_v55 }
 0x141   :  { %v130_v59 = vpack.c.bf16 %v95_v56, %v95_v56  ;;  %v86_v60 = vmul.f32 %v123_v43, %v75_v57 }
 0x142   :  { %v131_v61 = vpack.c.bf16 %v96_v58, %v96_v58 }
 0x143   :  { %116 = vst.msk [vmem:[%s209_s3 + $0x4] sm:$0xf] %vm114_vm1, %v130_v59  ;;  %v97_v62 = vadd.f32 %v124_v45, %v86_v60 }
 0x144   :  { %117 = vst.msk [vmem:[%s209_s3 + $0x8] sm:$0xf] %vm114_vm1, %v131_v61 }
 0x145   :  { %v132_v63 = vpack.c.bf16 %v97_v62, %v97_v62 }
 0x147   :  { %118 = vst.msk [vmem:[%s209_s3 + $0xc] sm:$0xf] %vm114_vm1, %v132_v63 }

// kernel: aristo_forward.13
= control target key start
LH: loop header
LB: loop body
LE: loop exit
PB: predicated region body
PF: predicated region fallthrough
CT: control target
= control target key end

     0   :  { %vm20_vm0 = vcmask 523264   ;;  %v284_v1 = vmov 0   ;;  %v285_v2 = vmov 0.0   ;;  %v187_v12 = vlaneseq  ;;  %s361_s1 = inlined_call_operand.vmem [shape: bf16[64,192], index: 1, kind: input, shape index: {}]   ;;  %s362_s0 = inlined_call_operand.vmem [shape: bf16[32,64], index: 0, kind: input, shape index: {}]   ;;  %s363_s2 = inlined_call_operand.vmem [shape: f32[1,192], index: 2, kind: input, shape index: {}]   ;;  %s364_s3 = inlined_call_operand.vmem [shape: bf16[32,192], index: 3, kind: output, shape index: {}]  }
   0x1   :  { %v270_v0 = vld [vmem:[%s361_s1 + $0x4] ss:$8 sps:$4 sm:$0xff]   ;;  %137 = vmatprep.mubr.bf16.mxu0 %v284_v1  ;;  %147 = vmatprep.mubr.bf16.mxu1 %v284_v1  ;;  %21 = vst.msk [vmem:[#allocation2 + $0x8] sm:$0xff] %vm20_vm0, %v285_v2  ;;  %23 = vst.msk [vmem:[#allocation2 + $0x18] sm:$0xff] %vm20_vm0, %v285_v2  ;;  %v272_v3 = vld [vmem:[%s361_s1] ss:$8 sps:$4 sm:$0xff]  }
   0x2   :  { %25 = vst.msk [vmem:[#allocation2 + $0x28] sm:$0xff] %vm20_vm0, %v285_v2  ;;  %27 = vst.msk [vmem:[#allocation2 + $0x38] sm:$0xff] %vm20_vm0, %v285_v2  ;;  %105 = vmatprep.subr.bf16.mxu0 %v270_v0  ;;  %260 = vmatprep.subr.bf16.mxu1 %v270_v0  ;;  %v273_v4 = vld [vmem:[%s361_s1 + $0x14] ss:$8 sps:$4 sm:$0xff]   ;;  %v275_v5 = vld [vmem:[%s361_s1 + $0x10] ss:$8 sps:$4 sm:$0xff]  }
   0x3   :  { %106 = vmatpush1.bf16.msra.mxu0 %v272_v3  ;;  %264 = vmatpush1.bf16.msra.mxu1 %v272_v3  ;;  %v276_v6 = vld [vmem:[%s361_s1 + $0x24] ss:$8 sps:$4 sm:$0xff]   ;;  %v278_v7 = vld [vmem:[%s361_s1 + $0x20] ss:$8 sps:$4 sm:$0xff]   ;;  %v279_v8 = vld [vmem:[%s361_s1 + $0x34] ss:$8 sps:$4 sm:$0xff]  }
   0x4   :  { %107 = vmatprep.subr.bf16.mxu0 %v273_v4  ;;  %261 = vmatprep.subr.bf16.mxu1 %v273_v4  ;;  %v281_v9 = vld [vmem:[%s361_s1 + $0x30] ss:$8 sps:$4 sm:$0xff]   ;;  %v282_v10 = vld [vmem:[%s362_s0] sm:$0xff]   ;;  %v283_v11 = vld [vmem:[%s362_s0 + $0x8] sm:$0xff]   ;;  %v188_v16 = vshrl.u32 %v187_v12, 7  ;;  %vm229_vm1 = vcmask 1043456  }
   0x5   :  { %v185_v32 = vld [vmem:[%s363_s2] sm:$0x3]  ;;  %vm230_vm2 = vcmask 523268  }
   0x6   :  { %v189_v28 = vsub.s32 0, %v188_v16  ;;  %v193_v29 = vsub.s32 1, %v188_v16  ;;  %vm231_vm3 = vmor %vm230_vm2, %vm229_vm1 }
   0x7   :  { %108 = vmatpush1.bf16.msra.mxu0 %v275_v5  ;;  %265 = vmatpush1.bf16.msra.mxu1 %v275_v5 }
   0x8   :  { %109 = vmatprep.subr.bf16.mxu0 %v276_v6  ;;  %262 = vmatprep.subr.bf16.mxu1 %v276_v6  ;;  %v29_v13 = vld [vmem:[#allocation2 + $0x8] sm:$0xff]  ;;  %v31_v20 = vld [vmem:[#allocation2 + $0x18] sm:$0xff]  ;;  %v190_v33 = vrot.slane %v185_v32, %v189_v28  ;;  %v194_v34 = vrot.slane %v185_v32, %v193_v29 }
   0x9   :  { %v33_v14 = vld [vmem:[#allocation2 + $0x28] sm:$0xff]  ;;  %v35_v21 = vld [vmem:[#allocation2 + $0x38] sm:$0xff] }
   0xb   :  { %110 = vmatpush1.bf16.msra.mxu0 %v278_v7  ;;  %266 = vmatpush1.bf16.msra.mxu1 %v278_v7 }
   0xc   :  { %111 = vmatprep.subr.bf16.mxu0 %v279_v8  ;;  %263 = vmatprep.subr.bf16.mxu1 %v279_v8 }
   0xf   :  { %112 = vmatpush1.bf16.msra.mxu0 %v281_v9  ;;  %267 = vmatpush1.bf16.msra.mxu1 %v281_v9 }
  0x12   :  { %250 = vmatmul.mubr.msk.bf16.vlgmr.msra.gmra.mrb[0].mxu0 %vm20_vm0, %v282_v10  ;;  %251 = vmatmul.mubr.msk.bf16.vlgmr.msra.gmra.mrb[0].mxu1 %vm20_vm0, %v283_v11 }
  0xe5   :  { %v139_v15 = vpop.f32.mrb[0].mxu0  ;;  %v149_v17 = vpop.f32.mrb[0].mxu1 }
  0xe6   :  { %v141_v18 = vpop.f32.mrb[1].mxu0  ;;  %v151_v19 = vpop.f32.mrb[1].mxu1  ;;  %v197_v37 = vadd.f32 %v190_v33, %v139_v15  ;;  %v201_v38 = vadd.f32 %v190_v33, %v149_v17 }
  0xe7   :  { %v159_v22 = vadd.f32 %v141_v18, %v29_v13  ;;  %v163_v23 = vadd.f32 %v151_v19, %v33_v14  ;;  %v143_v24 = vpop.f32.mrb[2].mxu0  ;;  %v153_v25 = vpop.f32.mrb[2].mxu1 }
  0xe8   :  { %v145_v26 = vpop.f32.mrb[3].mxu0  ;;  %v155_v27 = vpop.f32.mrb[3].mxu1  ;;  %v199_v41 = vadd.f32 %v190_v33, %v143_v24  ;;  %v203_v42 = vadd.f32 %v190_v33, %v153_v25 }
  0xe9   :  { %167 = vst.msk [vmem:[#allocation2 + $0x8] sm:$0xff] %vm20_vm0, %v159_v22  ;;  %171 = vst.msk [vmem:[#allocation2 + $0x28] sm:$0xff] %vm20_vm0, %v163_v23  ;;  %v161_v30 = vadd.f32 %v145_v26, %v31_v20  ;;  %v165_v31 = vadd.f32 %v155_v27, %v35_v21 }
  0xeb   :  { %169 = vst.msk [vmem:[#allocation2 + $0x18] sm:$0xff] %vm20_vm0, %v161_v30  ;;  %173 = vst.msk [vmem:[#allocation2 + $0x38] sm:$0xff] %vm20_vm0, %v165_v31 }
  0xf0   :  { %v178_v35 = vld [vmem:[#allocation2 + $0x8] sm:$0xff] }
  0xf1   :  { %v182_v36 = vld [vmem:[#allocation2 + $0x28] sm:$0xff]  ;;  %v198_v39 = vadd.f32 %v194_v34, %v178_v35 }
  0xf2   :  { %v202_v40 = vadd.f32 %v194_v34, %v182_v36  ;;  %v180_v43 = vld [vmem:[#allocation2 + $0x18] sm:$0xff] }
  0xf3   :  { %v184_v44 = vld [vmem:[#allocation2 + $0x38] sm:$0xff]  ;;  %v256_v45 = vpack.c.bf16 %v198_v39, %v197_v37  ;;  %v200_v47 = vadd.f32 %v194_v34, %v180_v43 }
  0xf4   :  { %v258_v46 = vpack.c.bf16 %v202_v40, %v201_v38  ;;  %v204_v48 = vadd.f32 %v194_v34, %v184_v44 }
  0xf5   :  { %232 = vst.msk [vmem:[%s364_s3] sm:$0xff] %vm231_vm3, %v256_v45  ;;  %v257_v49 = vpack.c.bf16 %v200_v47, %v199_v41 }
  0xf6   :  { %234 = vst.msk [vmem:[%s364_s3 + $0x10] sm:$0xff] %vm231_vm3, %v258_v46  ;;  %v259_v50 = vpack.c.bf16 %v204_v48, %v203_v42 }
  0xf7   :  { %233 = vst.msk [vmem:[%s364_s3 + $0x8] sm:$0xff] %vm231_vm3, %v257_v49 }
  0xf8   :  { %235 = vst.msk [vmem:[%s364_s3 + $0x18] sm:$0xff] %vm231_vm3, %v259_v50 }

// kernel: aristo_forward.15
= control target key start
LH: loop header
LB: loop body
LE: loop exit
PB: predicated region body
PF: predicated region fallthrough
CT: control target
= control target key end

     0   :  { %vm28_vm0 = vcmask 523264   ;;  %v338_v1 = vmov 0.0   ;;  %vm268_vm1 = vcmask 519168   ;;  %s441_s1 = inlined_call_operand.vmem [shape: bf16[64,64], index: 1, kind: input, shape index: {}]   ;;  %s442_s0 = inlined_call_operand.vmem [shape: bf16[32,64], index: 0, kind: input, shape index: {}]   ;;  %s443_s3 = inlined_call_operand.vmem [shape: bf16[32,64], index: 3, kind: input, shape index: {}]   ;;  %s444_s2 = inlined_call_operand.vmem [shape: f32[1,64], index: 2, kind: input, shape index: {}]   ;;  %s445_s4 = inlined_call_operand.vmem [shape: f32[1,64], index: 4, kind: input, shape index: {}]   ;;  %s446_s5 = inlined_call_operand.vmem [shape: f32[1,64], index: 5, kind: input, shape index: {}]   ;;  %s447_s6 = inlined_call_operand.vmem [shape: bf16[32,64], index: 6, kind: output, shape index: {}]  }
   0x1   :  { %v324_v0 = vld [vmem:[%s441_s1] sm:$0xff]   ;;  %31 = vst.msk [vmem:[#allocation2 + $0x10] sm:$0xff] %vm28_vm0, %v338_v1  ;;  %29 = vst.msk [vmem:[#allocation2] sm:$0xff] %vm28_vm0, %v338_v1  ;;  %v325_v2 = vld [vmem:[%s441_s1 + $0x8] sm:$0xff]  }
   0x2   :  { %30 = vst.msk [vmem:[#allocation2 + $0x8] sm:$0xff] %vm28_vm0, %v338_v1  ;;  %32 = vst.msk [vmem:[#allocation2 + $0x18] sm:$0xff] %vm28_vm0, %v338_v1  ;;  %311 = vmatprep.subr.bf16.mxu0 %v324_v0  ;;  %v326_v3 = vld [vmem:[%s441_s1 + $0x10] sm:$0xff]   ;;  %v328_v4 = vld [vmem:[%s442_s0] sm:$0xff]  }
   0x3   :  { %312 = vmatpush3.bf16.msra.mxu0 %v324_v0  ;;  %319 = vmatprep.mubr.msk.bf16.mxu0 %vm28_vm0, %v328_v4  ;;  %v327_v5 = vld [vmem:[%s441_s1 + $0x18] sm:$0xff]   ;;  %v329_v6 = vld [vmem:[%s442_s0 + $0x8] sm:$0xff]   ;;  %v297_v20 = vld [vmem:[%s443_s3] sm:$0xff]  }
   0x4   :  { %313 = vmatprep.subr.bf16.mxu0 %v325_v2  ;;  %v304_v19 = vld [vmem:[%s443_s3 + $0x8] sm:$0xff]   ;;  %v285_v21 = vld [vmem:[%s444_s2] ss:$0 sm:$0xff]  ;;  %v298_v24 = vunpack.c.l.bf16 %v297_v20  ;;  %v299_v30 = vunpack.c.h.bf16 %v297_v20 }
   0x5   :  { %v302_v22 = vunpack.c.l.bf16 %v304_v19  ;;  %v303_v27 = vunpack.c.h.bf16 %v304_v19 }
   0x7   :  { %314 = vmatpush3.bf16.msra.mxu0 %v325_v2 }
   0x8   :  { %315 = vmatprep.subr.bf16.mxu0 %v326_v3  ;;  %v35_v7 = vld [vmem:[#allocation2 + $0x10] sm:$0xff]  ;;  %v33_v8 = vld [vmem:[#allocation2] sm:$0xff] }
   0x9   :  { %v36_v10 = vld [vmem:[#allocation2 + $0x18] sm:$0xff]  ;;  %v34_v13 = vld [vmem:[#allocation2 + $0x8] sm:$0xff] }
   0xb   :  { %316 = vmatpush3.bf16.msra.mxu0 %v326_v3 }
   0xc   :  { %317 = vmatprep.subr.bf16.mxu0 %v327_v5 }
   0xf   :  { %318 = vmatpush3.bf16.msra.mxu0 %v327_v5 }
  0x12   :  { %320 = vmatmul.mubr.msk.bf16.vlgmr.msra.gmra.mrb[0].mxu0 %vm28_vm0, %v329_v6 }
  0xe5   :  { %v321_v9 = vpop.f32.mrb[0].mxu0 }
  0xe6   :  { %v141_v11 = vadd.f32 %v321_v9, %v35_v7  ;;  %v124_v12 = vpop.f32.mrb[1].mxu0 }
  0xe7   :  { %v139_v14 = vadd.f32 %v124_v12, %v33_v8  ;;  %v322_v15 = vpop.f32.mrb[2].mxu0 }
  0xe8   :  { %145 = vst.msk [vmem:[#allocation2 + $0x10] sm:$0xff] %vm28_vm0, %v141_v11  ;;  %v142_v16 = vadd.f32 %v322_v15, %v36_v10  ;;  %v127_v17 = vpop.f32.mrb[3].mxu0  ;;  %v286_v11 = vld [vmem:[%s445_s4] ss:$0 sm:$0xff] }
  0xe9   :  { %143 = vst.msk [vmem:[#allocation2] sm:$0xff] %vm28_vm0, %v139_v14  ;;  %v140_v18 = vadd.f32 %v127_v17, %v34_v13  ;;  %v287_v13 = vld [vmem:[%s446_s5] ss:$0 sm:$0xff] }
  0xea   :  { %146 = vst.msk [vmem:[#allocation2 + $0x18] sm:$0xff] %vm28_vm0, %v142_v16 }
  0xeb   :  { %144 = vst.msk [vmem:[#allocation2 + $0x8] sm:$0xff] %vm28_vm0, %v140_v18 }
  0xef   :  { %v152_v23 = vld [vmem:[#allocation2 + $0x10] sm:$0xff] }
  0xf0   :  { %v163_v25 = vadd.f32 %v285_v21, %v152_v23  ;;  %v150_v26 = vld [vmem:[#allocation2] sm:$0xff] }
  0xf1   :  { %v161_v28 = vadd.f32 %v285_v21, %v150_v26  ;;  %v153_v29 = vld [vmem:[#allocation2 + $0x18] sm:$0xff] }
  0xf2   :  { %v175_v31 = vadd.f32 %v302_v22, %v163_v25  ;;  %v164_v32 = vadd.f32 %v285_v21, %v153_v29  ;;  %v151_v33 = vld [vmem:[#allocation2 + $0x8] sm:$0xff] }
  0xf3   :  { %v173_v34 = vadd.f32 %v298_v24, %v161_v28  ;;  %v162_v35 = vadd.f32 %v285_v21, %v151_v33 }
  0xf4   :  { %v183_v36 = vsel %vm28_vm0, %v175_v31, 0.0  ;;  %v176_v37 = vadd.f32 %v303_v27, %v164_v32 }
  0xf5   :  { %184 = vadd.xlane.f32.xlu1 %v183_v36  ;;  %v177_v38 = vsel %vm28_vm0, %v173_v34, 0.0  ;;  %v174_v39 = vadd.f32 %v299_v30, %v162_v35 }
  0xf6   :  { %178 = vadd.xlane.f32.xlu0 %v177_v38  ;;  %v186_v40 = vsel %vm28_vm0, %v176_v37, 0.0 }
  0xf7   :  { %v180_v41 = vsel %vm28_vm0, %v174_v39, 0.0 }
  0xf9   :  { %187 = vadd.xlane.f32.xlu1 %v186_v40 }
  0xfa   :  { %181 = vadd.xlane.f32.xlu0 %v180_v41 }
 0x182   :  { %v185_v42 = vpop.xlane.xlu1 %184 }
 0x183   :  { %v192_v43 = vmul.f32 0.015625, %v185_v42  ;;  %v179_v44 = vpop.xlane.xlu0 %178 }
 0x184   :  { %v190_v45 = vmul.f32 0.015625, %v179_v44 }
 0x185   :  { %v196_v46 = vsub.f32 %v175_v31, %v192_v43 }
 0x186   :  { %v194_v47 = vsub.f32 %v173_v34, %v190_v45  ;;  %v188_v48 = vpop.xlane.xlu1 %187 }
 0x187   :  { %v193_v49 = vmul.f32 0.015625, %v188_v48  ;;  %v182_v50 = vpop.xlane.xlu0 %181  ;;  %v200_v56 = vmul.f32 %v196_v46, %v196_v46 }
 0x188   :  { %v191_v51 = vmul.f32 0.015625, %v182_v50  ;;  %v198_v52 = vmul.f32 %v194_v47, %v194_v47 }
 0x189   :  { %v197_v53 = vsub.f32 %v176_v37, %v193_v49  ;;  %v208_v58 = vsel %vm28_vm0, %v200_v56, 0.0 }
 0x18a   :  { %v195_v54 = vsub.f32 %v174_v39, %v191_v51  ;;  %v202_v55 = vsel %vm28_vm0, %v198_v52, 0.0 }
 0x18b   :  { %203 = vadd.xlane.f32.xlu0 %v202_v55  ;;  %v201_v60 = vmul.f32 %v197_v53, %v197_v53 }
 0x18c   :  { %v199_v57 = vmul.f32 %v195_v54, %v195_v54 }
 0x18d   :  { %v211_v61 = vsel %vm28_vm0, %v201_v60, 0.0 }
 0x18e   :  { %v205_v59 = vsel %vm28_vm0, %v199_v57, 0.0 }
 0x18f   :  { %209 = vadd.xlane.f32.xlu0 %v208_v58  ;;  %206 = vadd.xlane.f32.xlu1 %v205_v59 }
 0x193   :  { %212 = vadd.xlane.f32.xlu1 %v211_v61 }
 0x218   :  { %v204_v62 = vpop.xlane.xlu0 %203 }
 0x219   :  { %v214_v63 = vmul.f32 0.015625, %v204_v62 }
 0x21b   :  { %v218_v0 = vadd.f32 1e-05, %v214_v63 }
 0x21c   :  { %v207_v1 = vpop.xlane.xlu1 %206  ;;  %v210_v2 = vpop.xlane.xlu0 %209 }
 0x21d   :  { %330 = vrsqrt.f32 %v218_v0  ;;  %v215_v3 = vmul.f32 0.015625, %v207_v1  ;;  %v216_v4 = vmul.f32 0.015625, %v210_v2 }
 0x21f   :  { %v219_v5 = vadd.f32 1e-05, %v215_v3  ;;  %v220_v6 = vadd.f32 1e-05, %v216_v4 }
 0x220   :  { %v213_v7 = vpop.xlane.xlu1 %212 }
 0x221   :  { %332 = vrsqrt.f32 %v219_v5  ;;  %v217_v8 = vmul.f32 0.015625, %v213_v7 }
 0x222   :  { %334 = vrsqrt.f32 %v220_v6 }
 0x223   :  { %v221_v9 = vadd.f32 1e-05, %v217_v8 }
 0x225   :  { %336 = vrsqrt.f32 %v221_v9 }
 0x227   :  { %v331_v10 = vpop.eup %330 }
 0x228   :  { %v226_v12 = vmul.f32 %v331_v10, %v194_v47 }
 0x22a   :  { %v237_v14 = vmul.f32 %v286_v11, %v226_v12 }
 0x22b   :  { %v333_v15 = vpop.eup %332 }
 0x22c   :  { %v335_v16 = vpop.eup %334  ;;  %v248_v17 = vadd.f32 %v287_v13, %v237_v14  ;;  %v227_v18 = vmul.f32 %v333_v15, %v195_v54 }
 0x22d   :  { %v228_v19 = vmul.f32 %v335_v16, %v196_v46 }
 0x22e   :  { %v292_v20 = vpack.c.bf16 %v248_v17, %v248_v17  ;;  %v238_v21 = vmul.f32 %v286_v11, %v227_v18 }
 0x22f   :  { %v337_v22 = vpop.eup %336  ;;  %v239_v23 = vmul.f32 %v286_v11, %v228_v19 }
 0x230   :  { %269 = vst.msk [vmem:[%s447_s6] sm:$0xf] %vm268_vm1, %v292_v20  ;;  %v249_v24 = vadd.f32 %v287_v13, %v238_v21  ;;  %v229_v25 = vmul.f32 %v337_v22, %v197_v53 }
 0x231   :  { %v250_v26 = vadd.f32 %v287_v13, %v239_v23 }
 0x232   :  { %v293_v27 = vpack.c.bf16 %v249_v24, %v249_v24  ;;  %v240_v28 = vmul.f32 %v286_v11, %v229_v25 }
 0x233   :  { %v294_v29 = vpack.c.bf16 %v250_v26, %v250_v26 }
 0x234   :  { %270 = vst.msk [vmem:[%s447_s6 + $0x4] sm:$0xf] %vm268_vm1, %v293_v27  ;;  %v251_v30 = vadd.f32 %v287_v13, %v240_v28 }
 0x235   :  { %271 = vst.msk [vmem:[%s447_s6 + $0x8] sm:$0xf] %vm268_vm1, %v294_v29 }
 0x236   :  { %v295_v31 = vpack.c.bf16 %v251_v30, %v251_v30 }
 0x238   :  { %272 = vst.msk [vmem:[%s447_s6 + $0xc] sm:$0xf] %vm268_vm1, %v295_v31 }

// kernel: aristo_forward.14
= control target key start
LH: loop header
LB: loop body
LE: loop exit
PB: predicated region body
PF: predicated region fallthrough
CT: control target
= control target key end

     0   :  { %s855_s9 = smov 0   ;;  %s953_s0 = inlined_call_operand.vmem [shape: bf16[4,8,192], index: 0, kind: input, shape index: {}]   ;;  %s954_s1 = inlined_call_operand.vmem [shape: f32[4,1,8], index: 1, kind: input, shape index: {}]   ;;  %s955_s2 = inlined_call_operand.vmem [shape: bf16[4,8,64], index: 2, kind: output, shape index: {}]  }
   0x1 LB: > { %s702_s10 = sadd.s32 4294967295, %s829_s9   ;;  %p706_p0 = scmp.ge.s32.totalorder %s829_s9, 1  ;;  %s829_s9 = sphi %s855_s9, %s12_s9  }
   0x2   : > { %p120_p1 = scmp.lt.s32.totalorder %s829_s9, 5 }
   0x4   : > { %p121_p2 = pnand %p706_p0, %p120_p1 }
   0x5   : > { %p144_p3 = scmp.lt.s32.totalorder (!%p121_p2), %s702_s10, 3  ;;  %v831_v0 = vmov (!%p121_p2), 0.0   ;;  %vm832_vm0 = vmmov (!%p121_p2), 0   ;;  %s833_s15 = smov (!%p121_p2), 64   ;;  %vm164_vm1 = vcmask (!%p121_p2), 130048   ;;  %vm219_vm2 = vcmask (!%p121_p2), 64512  }
   0x6   : > { %124 = sbr.rel (%p121_p2) target bundleno = 1568 (0x620), region = 28  ;;  %740 = vmatprep.subr.bf16.mxu0 (!%p121_p2), %v831_v0  ;;  %742 = vmatprep.mubr.msk.bf16.mxu0 (!%p121_p2), %vm832_vm0, %v831_v0  ;;  %s834_s16 = smov (!%p121_p2), 48   ;;  %vm237_vm3 = vcmask (!%p121_p2), 1043456   ;;  %vm398_vm4 = vcmask (!%p121_p2), 261248   ;;  %vm516_vm5 = vcmask (!%p121_p2), 392448   ;;  %vm634_vm6 = vcmask (!%p121_p2), 523648  }
   0x7   : > { %746 = vmatprep.subr.bf16.mxu1 (!%p121_p2), %v831_v0  ;;  %748 = vmatprep.mubr.msk.bf16.mxu1 (!%p121_p2), %vm832_vm0, %v831_v0  ;;  %s835_s20 = smov (!%p121_p2), 80   ;;  %s836_s21 = smov (!%p121_p2), 112   ;;  %vm638_vm7 = vcmask (!%p121_p2), 519168  }
   0x8   : > { %s837_s22 = smov (!%p121_p2), 32   ;;  %s838_s23 = smov (!%p121_p2), 96  }
   0x9   : > { %s839_s24 = smov (!%p121_p2), 16  }
   0xd   : > { %s957_s10 = smov (!%p144_p3, %s702_s10), 3 }
   0xe   : > { %s723_s11 = sshll.u32 %s957_s10, 3  ;;  %s151_s19 = scalar_lea.vmem %s954_s1, %s957_s10 }
   0xf   : > { %s148_s14 = scalar_lea.vmem %s953_s0, %s723_s11  ;;  %v885_v6 = vld [vmem:[%s151_s19] ss:$0 sm:$0xff]  ;;  %s709_s25 = sshll.u32 %s957_s10, 2 }
  0x10   : > { %v157_v1 = vld [vmem:[%s148_s14] sm:$0xff]  ;;  %s155_s28 = scalar_lea.vmem %s955_s2, %s709_s25 }
  0x11   : > { %v710_v2 = vcombine.low %v157_v1, %v157_v1  ;;  %v891_v18 = vcombine.high %v157_v1, %v157_v1 }
  0x13   : > { %162 = vrot.lane.b32.xlu0 %v710_v2, %s833_s15  ;;  %284 = vrot.lane.b32.xlu1 %v710_v2, %s834_s16  ;;  %v239_v19 = vsel %vm237_vm3, %v891_v18, 0 }
  0x14   : > { %747 = vmatpush3.bf16.msra.mxu1 %v239_v19 }
  0x15   : > { %752 = vmatprep.subr.bf16.mxu1 %v831_v0 }
  0x85   : > { %v163_v3 = vpop.permute.xlu0 %162  ;;  %v285_v20 = vpop.permute.xlu1 %284 }
  0x86   : > { %v169_v4 = vsel %vm164_vm1, %v163_v3, 0  ;;  %v290_v27 = vsel %vm164_vm1, %v285_v20, 0 }
  0x87   : > { %741 = vmatpush3.bf16.xpose.msra.mxu0 %v169_v4 }
  0x88   : > { %758 = vmatprep.subr.bf16.mxu0 %v831_v0 }
  0x8e   : > { %743 = vmatmul.mubr.msk.bf16.vlgmr.msra.gmra.mrb[0].mxu0 %vm164_vm1, %v157_v1 }
  0x8f   : > { %760 = vmatprep.mubr.msk.bf16.mxu0 %vm832_vm0, %v831_v0 }
 0x161   : > { %v205_v5 = vpop.f32.mrb[0].mxu0 }
 0x162   : > { %v211_v7 = vmul.f32 0.25, %v205_v5  ;;  %v744_v8 = vpop.f32.mrb[1].mxu0 }
 0x163   : > { %v208_v9 = vpop.f32.mrb[2].mxu0 }
 0x164   : > { %v745_v10 = vpop.f32.mrb[3].mxu0  ;;  %v218_v11 = vadd.f32 %v885_v6, %v211_v7 }
 0x166   : > { %v220_v12 = vsel %vm219_vm2, %v218_v11, -inf }
 0x167   : > { %221 = vmax.xlane.f32.xlu0 %v220_v12 }
 0x17d   : > { %518 = vrot.lane.b32.xlu0 %v710_v2, %s835_s20 }
 0x1f4   : > { %v222_v13 = vpop.xlane.xlu0 %221 }
 0x1f5   : > { %v223_v14 = vsub.f32 %v218_v11, %v222_v13 }
 0x1f7   : > { %v224_v15 = vmul.f32 1.442695, %v223_v14 }
 0x1f8   : > { %v519_v32 = vpop.permute.xlu0 %518 }
 0x1f9   : > { %807 = vpow2.f32 %v224_v15 }
 0x203   : > { %v808_v16 = vpop.eup %807 }
 0x204   : > { %v226_v17 = vsel %vm219_vm2, %v808_v16, 0.0 }
 0x205   : > { %227 = vadd.xlane.f32.xlu1 %v226_v17 }
 0x216   : > { %282 = vrot.lane.b32.xlu1 %v710_v2, %s836_s21 }
 0x21a   : > { %402 = vrot.lane.b32.xlu1 %v710_v2, %s837_s22 }
 0x21e   : > { %400 = vrot.lane.b32.xlu1 %v710_v2, %s838_s23 }
 0x222   : > { %520 = vrot.lane.b32.xlu1 %v710_v2, %s839_s24 }
 0x292   : > { %v228_v21 = vpop.xlane.xlu1 %227 }
 0x293   : > { %809 = vrcp.f32 %v228_v21 }
 0x296   : > { %v283_v22 = vpop.permute.xlu1 %282 }
 0x29a   : > { %v403_v26 = vpop.permute.xlu1 %402 }
 0x29b   : > { %v408_v29 = vsel %vm164_vm1, %v403_v26, 0 }
 0x29d   : > { %v810_v23 = vpop.eup %809 }
 0x29e   : > { %v230_v24 = vmul.f32 %v810_v23, %v808_v16  ;;  %v401_v28 = vpop.permute.xlu1 %400 }
 0x2a0   : > { %v231_v25 = vpack.c.bf16 %v230_v24, %v230_v24 }
 0x2a2   : > { %749 = vmatmul.mubr.msk.bf16.vlgmr.msra.gmra.mrb[0].mxu1 %vm219_vm2, %v231_v25  ;;  %v521_v30 = vpop.permute.xlu1 %520 }
 0x2a3   : > { %753 = vmatpush3.bf16.xpose.msra.mxu1 %v290_v27  ;;  %754 = vmatprep.mubr.msk.bf16.mxu1 %vm832_vm0, %v831_v0  ;;  %v526_v31 = vsel %vm164_vm1, %v521_v30, 0 }
 0x2a4   : > { %764 = vmatprep.subr.bf16.mxu1 %v831_v0 }
 0x2aa   : > { %755 = vmatmul.mubr.msk.bf16.vlgmr.msra.gmra.mrb[4].mxu1 %vm164_vm1, %v283_v22 }
 0x2ab   : > { %765 = vmatpush3.bf16.xpose.msra.mxu1 %v408_v29  ;;  %766 = vmatprep.mubr.msk.bf16.mxu1 %vm832_vm0, %v831_v0 }
 0x2ac   : > { %776 = vmatprep.subr.bf16.mxu1 %v831_v0 }
 0x2b2   : > { %767 = vmatmul.mubr.msk.bf16.vlgmr.msra.gmra.mrb[8].mxu1 %vm164_vm1, %v401_v28 }
 0x2b3   : > { %777 = vmatpush3.bf16.xpose.msra.mxu1 %v526_v31  ;;  %778 = vmatprep.mubr.msk.bf16.mxu1 %vm832_vm0, %v831_v0 }
 0x2ba   : > { %779 = vmatmul.mubr.msk.bf16.vlgmr.msra.gmra.mrb[12].mxu1 %vm164_vm1, %v519_v32 }
 0x375   : > { %v275_v33 = vpop.f32.mrb[0].mxu1 }
 0x376   : > { %281 = vst.msk [vmem:[#allocation2] sm:$0xff] %vm164_vm1, %v275_v33  ;;  %v750_v34 = vpop.f32.mrb[1].mxu1 }
 0x377   : > { %v278_v35 = vpop.f32.mrb[2].mxu1 }
 0x378   : > { %v751_v36 = vpop.f32.mrb[3].mxu1 }
 0x37d   : > { %v326_v37 = vpop.f32.mrb[4].mxu1 }
 0x37e   : > { %v332_v38 = vmul.f32 0.25, %v326_v37  ;;  %v756_v39 = vpop.f32.mrb[5].mxu1 }
 0x37f   : > { %v329_v40 = vpop.f32.mrb[6].mxu1 }
 0x380   : > { %v757_v41 = vpop.f32.mrb[7].mxu1  ;;  %v333_v42 = vadd.f32 %v885_v6, %v332_v38 }
 0x382   : > { %v334_v43 = vsel %vm219_vm2, %v333_v42, -inf }
 0x383   : > { %335 = vmax.xlane.f32.xlu1 %v334_v43 }
 0x385   : > { %v444_v44 = vpop.f32.mrb[8].mxu1 }
 0x386   : > { %v450_v45 = vmul.f32 0.25, %v444_v44  ;;  %v768_v46 = vpop.f32.mrb[9].mxu1 }
 0x387   : > { %v447_v47 = vpop.f32.mrb[10].mxu1 }
 0x388   : > { %v769_v48 = vpop.f32.mrb[11].mxu1  ;;  %v451_v49 = vadd.f32 %v885_v6, %v450_v45 }
 0x38a   : > { %v452_v50 = vsel %vm219_vm2, %v451_v49, -inf }
 0x38b   : > { %453 = vmax.xlane.f32.xlu0 %v452_v50 }
 0x38d   : > { %v562_v51 = vpop.f32.mrb[12].mxu1 }
 0x38e   : > { %v568_v52 = vmul.f32 0.25, %v562_v51  ;;  %v780_v53 = vpop.f32.mrb[13].mxu1 }
 0x38f   : > { %v565_v54 = vpop.f32.mrb[14].mxu1 }
 0x390   : > { %v781_v55 = vpop.f32.mrb[15].mxu1  ;;  %v569_v56 = vadd.f32 %v885_v6, %v568_v52 }
 0x392   : > { %v570_v57 = vsel %vm219_vm2, %v569_v56, -inf }
 0x393   : > { %571 = vmax.xlane.f32.xlu1 %v570_v57 }
 0x3a1   : > { %346 = vrot.lane.b32.xlu0 %v891_v18, %s836_s21 }
 0x3a4   : > { %464 = vrot.lane.b32.xlu1 %v891_v18, %s838_s23 }
 0x410   : > { %v336_v58 = vpop.xlane.xlu1 %335 }
 0x411   : > { %v337_v59 = vsub.f32 %v333_v42, %v336_v58 }
 0x413   : > { %v338_v60 = vmul.f32 1.442695, %v337_v59 }
 0x415   : > { %811 = vpow2.f32 %v338_v60 }
 0x418   : > { %v454_v61 = vpop.xlane.xlu0 %453 }
 0x419   : > { %v455_v62 = vsub.f32 %v451_v49, %v454_v61 }
 0x41b   : > { %v456_v63 = vmul.f32 1.442695, %v455_v62 }
 0x41c   : > { %v347_v10 = vpop.permute.xlu0 %346 }
 0x41d   : > { %813 = vpow2.f32 %v456_v63  ;;  %v352_v11 = vsel %vm237_vm3, %v347_v10, 0 }
 0x41e   : > { %759 = vmatpush3.bf16.msra.mxu0 %v352_v11 }
 0x41f   : > { %v812_v1 = vpop.eup %811  ;;  %770 = vmatprep.subr.bf16.mxu0 %v831_v0 }
 0x420   : > { %v572_v2 = vpop.xlane.xlu1 %571  ;;  %v340_v3 = vsel %vm219_vm2, %v812_v1, 0.0 }
 0x421   : > { %v573_v4 = vsub.f32 %v569_v56, %v572_v2  ;;  %341 = vadd.xlane.f32.xlu1 %v340_v3 }
 0x423   : > { %v574_v5 = vmul.f32 1.442695, %v573_v4 }
 0x424   : > { %v465_v12 = vpop.permute.xlu1 %464 }
 0x425   : > { %815 = vpow2.f32 %v574_v5  ;;  %v470_v19 = vsel %vm237_vm3, %v465_v12, 0 }
 0x427   : > { %v814_v6 = vpop.eup %813 }
 0x428   : > { %v458_v7 = vsel %vm219_vm2, %v814_v6, 0.0 }
 0x429   : > { %459 = vadd.xlane.f32.xlu1 %v458_v7 }
 0x42f   : > { %v816_v8 = vpop.eup %815 }
 0x430   : > { %v576_v9 = vsel %vm219_vm2, %v816_v8, 0.0 }
 0x431   : > { %577 = vadd.xlane.f32.xlu1 %v576_v9 }
 0x442   : > { %582 = vrot.lane.b32.xlu1 %v891_v18, %s835_s20 }
 0x4ae   : > { %v342_v13 = vpop.xlane.xlu1 %341 }
 0x4af   : > { %817 = vrcp.f32 %v342_v13 }
 0x4b6   : > { %v460_v14 = vpop.xlane.xlu1 %459 }
 0x4b7   : > { %819 = vrcp.f32 %v460_v14 }
 0x4b9   : > { %v818_v15 = vpop.eup %817 }
 0x4ba   : > { %v344_v16 = vmul.f32 %v818_v15, %v812_v1 }
 0x4bc   : > { %v345_v17 = vpack.c.bf16 %v344_v16, %v344_v16 }
 0x4be   : > { %v578_v20 = vpop.xlane.xlu1 %577  ;;  %761 = vmatmul.mubr.msk.bf16.vlgmr.msra.gmra.mrb[4].mxu0 %vm219_vm2, %v345_v17 }
 0x4bf   : > { %821 = vrcp.f32 %v578_v20  ;;  %771 = vmatpush3.bf16.msra.mxu0 %v470_v19  ;;  %772 = vmatprep.mubr.msk.bf16.mxu0 %vm832_vm0, %v831_v0 }
 0x4c0   : > { %782 = vmatprep.subr.bf16.mxu0 %v831_v0 }
 0x4c1   : > { %v820_v18 = vpop.eup %819 }
 0x4c2   : > { %v462_v21 = vmul.f32 %v820_v18, %v814_v6  ;;  %v583_v22 = vpop.permute.xlu1 %582 }
 0x4c3   : > { %v588_v23 = vsel %vm237_vm3, %v583_v22, 0 }
 0x4c4   : > { %v463_v24 = vpack.c.bf16 %v462_v21, %v462_v21 }
 0x4c6   : > { %773 = vmatmul.mubr.msk.bf16.vlgmr.msra.gmra.mrb[8].mxu0 %vm219_vm2, %v463_v24 }
 0x4c7   : > { %783 = vmatpush3.bf16.msra.mxu0 %v588_v23  ;;  %784 = vmatprep.mubr.msk.bf16.mxu0 %vm832_vm0, %v831_v0 }
 0x4c9   : > { %v822_v25 = vpop.eup %821 }
 0x4ca   : > { %v580_v26 = vmul.f32 %v822_v25, %v816_v8 }
 0x4cc   : > { %v581_v27 = vpack.c.bf16 %v580_v26, %v580_v26 }
 0x4ce   : > { %785 = vmatmul.mubr.msk.bf16.vlgmr.msra.gmra.mrb[12].mxu0 %vm219_vm2, %v581_v27 }
 0x591   : > { %v388_v28 = vpop.f32.mrb[4].mxu0 }
 0x592   : > { %395 = vrot.lane.b32.xlu0 %v388_v28, %s839_s24  ;;  %v762_v29 = vpop.f32.mrb[5].mxu0 }
 0x593   : > { %v391_v30 = vpop.f32.mrb[6].mxu0 }
 0x594   : > { %v763_v31 = vpop.f32.mrb[7].mxu0 }
 0x599   : > { %v506_v32 = vpop.f32.mrb[8].mxu0 }
 0x59a   : > { %513 = vrot.lane.b32.xlu1 %v506_v32, %s837_s22  ;;  %v774_v33 = vpop.f32.mrb[9].mxu0 }
 0x59b   : > { %v509_v34 = vpop.f32.mrb[10].mxu0 }
 0x59c   : > { %v775_v35 = vpop.f32.mrb[11].mxu0 }
 0x5a1   : > { %v624_v36 = vpop.f32.mrb[12].mxu0 }
 0x5a2   : > { %631 = vrot.lane.b32.xlu0 %v624_v36, %s834_s16  ;;  %v786_v0 = vpop.f32.mrb[13].mxu0 }
 0x5a3   : > { %v627_v37 = vpop.f32.mrb[14].mxu0 }
 0x5a4   : > { %v787_v38 = vpop.f32.mrb[15].mxu0 }
 0x604   : > { %v396_v39 = vpop.permute.xlu0 %395 }
 0x605   : > { %399 = vst.msk [vmem:[#allocation2] sm:$0xff] %vm398_vm4, %v396_v39 }
 0x60c   : > { %v514_v40 = vpop.permute.xlu1 %513 }
 0x60d   : > { %517 = vst.msk [vmem:[#allocation2] sm:$0xff] %vm516_vm5, %v514_v40 }
 0x614   : > { %v632_v41 = vpop.permute.xlu0 %631 }
 0x615   : > { %635 = vst.msk [vmem:[#allocation2] sm:$0xff] %vm634_vm6, %v632_v41 }
 0x61c   : > { %v636_v42 = vld [vmem:[#allocation2] sm:$0xff] }
 0x61d   : > { %v637_v43 = vpack.c.bf16 %v636_v42, %v636_v42 }
 0x61f   : > { %639 = vst.msk [vmem:[%s155_s28] sm:$0xf] %vm638_vm7, %v637_v43 }
 0x620 PF: > { %s12_s9 = sadd.s32 1, %s829_s9  }
 0x621   : > { %p9_p4 = scmp.ge.s32.totalorder %s12_s9, 6  }
 0x623   :  { %11 = sbr.rel (!%p9_p4) target bundleno = 1 (0x1), region = 61 }

// kernel: aristo_forward.16
= control target key start
LH: loop header
LB: loop body
LE: loop exit
PB: predicated region body
PF: predicated region fallthrough
CT: control target
= control target key end

     0   :  { %vm73_vm0 = vcmask 523264   ;;  %s322_s1 = inlined_call_operand.vmem [shape: bf16[64,128], index: 1, kind: input, shape index: {}]   ;;  %s323_s0 = inlined_call_operand.vmem [shape: bf16[32,64], index: 0, kind: input, shape index: {}]   ;;  %s324_s2 = inlined_call_operand.vmem [shape: f32[1,128], index: 2, kind: input, shape index: {}]   ;;  %s325_s3 = inlined_call_operand.vmem [shape: bf16[32,128], index: 3, kind: output, shape index: {}]  }
   0x1   :  { %v261_v0 = vld [vmem:[%s322_s1] sm:$0xff]   ;;  %v262_v1 = vld [vmem:[%s322_s1 + $0x8] sm:$0xff]   ;;  %v263_v2 = vld [vmem:[%s322_s1 + $0x10] sm:$0xff]  }
   0x2   :  { %249 = vmatprep.subr.bf16.mxu0 %v261_v0  ;;  %v265_v3 = vld [vmem:[%s323_s0] sm:$0xff]   ;;  %v264_v4 = vld [vmem:[%s322_s1 + $0x18] sm:$0xff]   ;;  %v266_v5 = vld [vmem:[%s323_s0 + $0x8] sm:$0xff]  }
   0x3   :  { %250 = vmatpush3.bf16.msra.mxu0 %v261_v0  ;;  %257 = vmatprep.mubr.msk.bf16.mxu0 %vm73_vm0, %v265_v3  ;;  %v223_v6 = vld [vmem:[%s324_s2] ss:$0 sm:$0xff] }
   0x4   :  { %251 = vmatprep.subr.bf16.mxu0 %v262_v1 }
   0x7   :  { %252 = vmatpush3.bf16.msra.mxu0 %v262_v1 }
   0x8   :  { %253 = vmatprep.subr.bf16.mxu0 %v263_v2 }
   0xb   :  { %254 = vmatpush3.bf16.msra.mxu0 %v263_v2 }
   0xc   :  { %255 = vmatprep.subr.bf16.mxu0 %v264_v4 }
   0xf   :  { %256 = vmatpush3.bf16.msra.mxu0 %v264_v4 }
  0x12   :  { %258 = vmatmul.mubr.msk.bf16.vlgmr.msra.gmra.mrb[0].mxu0 %vm73_vm0, %v266_v5 }
  0xe5   :  { %v259_v7 = vpop.f32.mrb[0].mxu0 }
  0xe6   :  { %v153_v8 = vadd.f32 %v259_v7, %v223_v6  ;;  %v114_v9 = vpop.f32.mrb[1].mxu0 }
  0xe7   :  { %v151_v10 = vadd.f32 %v223_v6, %v114_v9  ;;  %v260_v11 = vpop.f32.mrb[2].mxu0 }
  0xe8   :  { %v157_v12 = vmul.f32 %v153_v8, %v153_v8  ;;  %v154_v13 = vadd.f32 %v260_v11, %v223_v6  ;;  %v117_v14 = vpop.f32.mrb[3].mxu0 }
  0xe9   :  { %v155_v15 = vmul.f32 %v151_v10, %v151_v10  ;;  %v152_v16 = vadd.f32 %v223_v6, %v117_v14 }
  0xea   :  { %v161_v17 = vmul.f32 %v157_v12, %v153_v8  ;;  %v158_v18 = vmul.f32 %v154_v13, %v154_v13 }
  0xeb   :  { %v159_v19 = vmul.f32 %v155_v15, %v151_v10  ;;  %v156_v20 = vmul.f32 %v152_v16, %v152_v16 }
  0xec   :  { %v165_v21 = vmul.f32 0.044715, %v161_v17  ;;  %v162_v22 = vmul.f32 %v158_v18, %v154_v13 }
  0xed   :  { %v163_v23 = vmul.f32 0.044715, %v159_v19  ;;  %v160_v24 = vmul.f32 %v156_v20, %v152_v16 }
  0xee   :  { %v169_v25 = vadd.f32 %v165_v21, %v153_v8  ;;  %v166_v26 = vmul.f32 0.044715, %v162_v22 }
  0xef   :  { %v167_v27 = vadd.f32 %v163_v23, %v151_v10  ;;  %v164_v28 = vmul.f32 0.044715, %v160_v24 }
  0xf0   :  { %v173_v29 = vmul.f32 0.7978846, %v169_v25  ;;  %v170_v30 = vadd.f32 %v166_v26, %v154_v13 }
  0xf1   :  { %v171_v31 = vmul.f32 0.7978846, %v167_v27  ;;  %v168_v32 = vadd.f32 %v164_v28, %v152_v16 }
  0xf2   :  { %267 = vtanh.f32 %v173_v29  ;;  %v174_v33 = vmul.f32 0.7978846, %v170_v30 }
  0xf3   :  { %269 = vtanh.f32 %v171_v31  ;;  %v172_v34 = vmul.f32 0.7978846, %v168_v32 }
  0xf4   :  { %271 = vtanh.f32 %v174_v33 }
  0xf5   :  { %273 = vtanh.f32 %v172_v34 }
  0xfc   :  { %v268_v35 = vpop.eup %267 }
  0xfd   :  { %v270_v36 = vpop.eup %269  ;;  %v181_v37 = vadd.f32 1.0, %v268_v35 }
  0xfe   :  { %v272_v38 = vpop.eup %271  ;;  %v179_v39 = vadd.f32 1.0, %v270_v36 }
  0xff   :  { %v274_v40 = vpop.eup %273  ;;  %v185_v41 = vmul.f32 0.5, %v181_v37  ;;  %v182_v42 = vadd.f32 1.0, %v272_v38 }
 0x100   :  { %v183_v43 = vmul.f32 0.5, %v179_v39  ;;  %v180_v44 = vadd.f32 1.0, %v274_v40 }
 0x101   :  { %v186_v45 = vmul.f32 0.5, %v182_v42  ;;  %v189_v47 = vmul.f32 %v185_v41, %v153_v8 }
 0x102   :  { %v184_v46 = vmul.f32 0.5, %v180_v44  ;;  %v187_v49 = vmul.f32 %v183_v43, %v151_v10 }
 0x103   :  { %v190_v48 = vmul.f32 %v186_v45, %v154_v13 }
 0x104   :  { %v188_v50 = vmul.f32 %v184_v46, %v152_v16 }
 0x105   :  { %v240_v51 = vpack.c.bf16 %v190_v48, %v189_v47 }
 0x106   :  { %v235_v52 = vpack.c.bf16 %v188_v50, %v187_v49 }
 0x107   :  { %242 = vst [vmem:[%s325_s3 + $0x8] sm:$0xff] %v240_v51  }
 0x108   :  { %236 = vst [vmem:[%s325_s3] sm:$0xff] %v235_v52  }

// kernel: aristo_forward.23
= control target key start
LH: loop header
LB: loop body
LE: loop exit
PB: predicated region body
PF: predicated region fallthrough
CT: control target
= control target key end

     0   :  { %v165_v0 = vmov 0.0   ;;  %vm166_vm0 = vmmov 0   ;;  %vm63_vm1 = vcmask 523264   ;;  %v110_v8 = vlaneseq  ;;  %s224_s1 = inlined_call_operand.vmem [shape: bf16[64,64], index: 1, kind: input, shape index: {}]   ;;  %s225_s0 = inlined_call_operand.vmem [shape: bf16[4,64], index: 0, kind: input, shape index: {}]   ;;  %s226_s4 = inlined_call_operand.<no memory space> [shape: f32[1,1], index: 4, kind: input, shape index: {}]   ;;  %s227_s2 = inlined_call_operand.vmem [shape: f32[1,64], index: 2, kind: input, shape index: {}]   ;;  %s228_s3 = inlined_call_operand.vmem [shape: bf16[1,64], index: 3, kind: input, shape index: {}]   ;;  %s229_s5 = inlined_call_operand.vmem [shape: f32[4,1], index: 5, kind: output, shape index: {}]  }
   0x1   :  { %145 = vmatprep.subr.bf16.mxu0 %v165_v0  ;;  %v159_v1 = vld [vmem:[%s224_s1] sm:$0xff]   ;;  %153 = vmatprep.mubr.msk.bf16.mxu0 %vm166_vm0, %v165_v0  ;;  %v160_v2 = vld [vmem:[%s224_s1 + $0x8] sm:$0xff]   ;;  %v161_v3 = vld [vmem:[%s224_s1 + $0x10] sm:$0xff]   ;;  %v10_v6 = vstv %s226_s4  ;;  %vm115_vm2 = vcmask 519168   ;;  %vm127_vm3 = vcmask 3072  }
   0x2   :  { %146 = vmatpush3.bf16.msra.mxu0 %v159_v1  ;;  %v162_v4 = vld [vmem:[%s224_s1 + $0x18] sm:$0xff]   ;;  %v23_v5 = vld [vmem:[%s225_s0] sm:$0x3]  ;;  %11 = vst [vmem:[#allocation2] sm:$0x1] %v10_v6  ;;  %v111_v13 = vshrl.u32 %v110_v8, 7 }
   0x3   :  { %147 = vmatprep.subr.bf16.mxu0 %v165_v0  ;;  %v133_v7 = vld [vmem:[%s227_s2] ss:$0 sm:$0xff] }
   0x4   :  { %v108_v15 = vld [vmem:[%s228_s3] sm:$0x1]  ;;  %v112_v17 = vsub.s32 0, %v111_v13 }
   0x5   :  { %v109_v16 = vunpack.c.l.bf16 %v108_v15 }
   0x6   :  { %148 = vmatpush3.bf16.msra.mxu0 %v160_v2 }
   0x7   :  { %149 = vmatprep.subr.bf16.mxu0 %v165_v0  ;;  %v113_v18 = vrot.slane %v109_v16, %v112_v17 }
   0x9   :  { %v139_v22 = vld [vmem:[#allocation2] ss:$0 sm:$0xff] }
   0xa   :  { %150 = vmatpush3.bf16.msra.mxu0 %v161_v3 }
   0xb   :  { %151 = vmatprep.subr.bf16.mxu0 %v165_v0 }
   0xe   :  { %152 = vmatpush3.bf16.msra.mxu0 %v162_v4 }
  0x11   :  { %154 = vmatmul.mubr.msk.bf16.vlgmr.msra.gmra.mrb[0].mxu0 %vm63_vm1, %v23_v5 }
  0xe4   :  { %v101_v9 = vpop.f32.mrb[0].mxu0 }
  0xe5   :  { %v102_v10 = vadd.f32 %v133_v7, %v101_v9  ;;  %v155_v11 = vpop.f32.mrb[1].mxu0 }
  0xe6   :  { %v104_v12 = vpop.f32.mrb[2].mxu0 }
  0xe7   :  { %163 = vtanh.f32 %v102_v10  ;;  %v156_v14 = vpop.f32.mrb[3].mxu0 }
  0xf1   :  { %v164_v19 = vpop.eup %163 }
  0xf2   :  { %v114_v20 = vmul.f32 %v164_v19, %v113_v18 }
  0xf4   :  { %v116_v21 = vsel %vm115_vm2, %v114_v20, 0.0 }
  0xf5   :  { %117 = vadd.xlane.f32.xlu0 %v116_v21 }
 0x182   :  { %v118_v23 = vpop.xlane.xlu0 %117 }
 0x183   :  { %v126_v24 = vadd.f32 %v139_v22, %v118_v23 }
 0x185   :  { %128 = vst.msk [vmem:[%s229_s5] sm:$0xf] %vm127_vm3, %v126_v24 }

// kernel: aristo_forward.17
= control target key start
LH: loop header
LB: loop body
LE: loop exit
PB: predicated region body
PF: predicated region fallthrough
CT: control target
= control target key end

     0   :  { %vm28_vm0 = vcmask 523264   ;;  %v384_v1 = vmov 0.0   ;;  %vm296_vm1 = vcmask 519168   ;;  %s497_s1 = inlined_call_operand.vmem [shape: bf16[128,64], index: 1, kind: input, shape index: {}]   ;;  %s498_s0 = inlined_call_operand.vmem [shape: bf16[32,128], index: 0, kind: input, shape index: {}]   ;;  %s499_s3 = inlined_call_operand.vmem [shape: bf16[32,64], index: 3, kind: input, shape index: {}]   ;;  %s500_s2 = inlined_call_operand.vmem [shape: f32[1,64], index: 2, kind: input, shape index: {}]   ;;  %s501_s4 = inlined_call_operand.vmem [shape: f32[1,64], index: 4, kind: input, shape index: {}]   ;;  %s502_s5 = inlined_call_operand.vmem [shape: f32[1,64], index: 5, kind: input, shape index: {}]   ;;  %s503_s6 = inlined_call_operand.vmem [shape: bf16[32,64], index: 6, kind: output, shape index: {}]  }
   0x1   :  { %v366_v0 = vld [vmem:[%s497_s1] sm:$0xff]   ;;  %31 = vst.msk [vmem:[#allocation2 + $0x10] sm:$0xff] %vm28_vm0, %v384_v1  ;;  %29 = vst.msk [vmem:[#allocation2] sm:$0xff] %vm28_vm0, %v384_v1  ;;  %v367_v2 = vld [vmem:[%s497_s1 + $0x8] sm:$0xff]  }
   0x2   :  { %30 = vst.msk [vmem:[#allocation2 + $0x8] sm:$0xff] %vm28_vm0, %v384_v1  ;;  %32 = vst.msk [vmem:[#allocation2 + $0x18] sm:$0xff] %vm28_vm0, %v384_v1  ;;  %345 = vmatprep.subr.bf16.mxu0 %v366_v0  ;;  %v368_v3 = vld [vmem:[%s497_s1 + $0x10] sm:$0xff]   ;;  %v369_v4 = vld [vmem:[%s497_s1 + $0x18] sm:$0xff]  }
   0x3   :  { %346 = vmatpush3.bf16.msra.mxu0 %v366_v0  ;;  %v374_v5 = vld [vmem:[%s498_s0] sm:$0xff]   ;;  %v371_v7 = vld [vmem:[%s497_s1 + $0x28] sm:$0xff]   ;;  %v372_v8 = vld [vmem:[%s497_s1 + $0x30] sm:$0xff]  }
   0x4   :  { %347 = vmatprep.subr.bf16.mxu0 %v367_v2  ;;  %361 = vmatprep.mubr.bf16.mxu0 %v374_v5  ;;  %v370_v6 = vld [vmem:[%s497_s1 + $0x20] sm:$0xff]   ;;  %v373_v9 = vld [vmem:[%s497_s1 + $0x38] sm:$0xff]   ;;  %v375_v10 = vld [vmem:[%s498_s0 + $0x8] sm:$0xff]  }
   0x5   :  { %v334_v23 = vld [vmem:[%s499_s3 + $0x8] sm:$0xff]   ;;  %v327_v24 = vld [vmem:[%s499_s3] sm:$0xff]  }
   0x6   :  { %v315_v25 = vld [vmem:[%s500_s2] ss:$0 sm:$0xff]  ;;  %v332_v26 = vunpack.c.l.bf16 %v334_v23  ;;  %v328_v28 = vunpack.c.l.bf16 %v327_v24  ;;  %v333_v31 = vunpack.c.h.bf16 %v334_v23  ;;  %v329_v34 = vunpack.c.h.bf16 %v327_v24 }
   0x7   :  { %348 = vmatpush3.bf16.msra.mxu0 %v367_v2 }
   0x8   :  { %349 = vmatprep.subr.bf16.mxu0 %v368_v3  ;;  %v35_v11 = vld [vmem:[#allocation2 + $0x10] sm:$0xff]  ;;  %v33_v12 = vld [vmem:[#allocation2] sm:$0xff] }
   0x9   :  { %v36_v14 = vld [vmem:[#allocation2 + $0x18] sm:$0xff]  ;;  %v34_v17 = vld [vmem:[#allocation2 + $0x8] sm:$0xff] }
   0xb   :  { %350 = vmatpush3.bf16.msra.mxu0 %v368_v3 }
   0xc   :  { %351 = vmatprep.subr.bf16.mxu0 %v369_v4 }
   0xf   :  { %352 = vmatpush3.bf16.msra.mxu0 %v369_v4 }
  0x10   :  { %353 = vmatprep.subr.bf16.mxu0 %v370_v6 }
  0x13   :  { %354 = vmatpush3.bf16.msra.mxu0 %v370_v6 }
  0x14   :  { %355 = vmatprep.subr.bf16.mxu0 %v371_v7 }
  0x17   :  { %356 = vmatpush3.bf16.msra.mxu0 %v371_v7 }
  0x18   :  { %357 = vmatprep.subr.bf16.mxu0 %v372_v8 }
  0x1b   :  { %358 = vmatpush3.bf16.msra.mxu0 %v372_v8 }
  0x1c   :  { %359 = vmatprep.subr.bf16.mxu0 %v373_v9 }
  0x1f   :  { %360 = vmatpush3.bf16.msra.mxu0 %v373_v9 }
  0x22   :  { %362 = vmatmul.mubr.bf16.vlgmr.msra.gmra.mrb[0].mxu0 %v375_v10 }
  0xf5   :  { %v363_v13 = vpop.f32.mrb[0].mxu0 }
  0xf6   :  { %v168_v15 = vadd.f32 %v363_v13, %v35_v11  ;;  %v151_v16 = vpop.f32.mrb[1].mxu0 }
  0xf7   :  { %v166_v18 = vadd.f32 %v151_v16, %v33_v12  ;;  %v364_v19 = vpop.f32.mrb[2].mxu0 }
  0xf8   :  { %173 = vst.msk [vmem:[#allocation2 + $0x10] sm:$0xff] %vm28_vm0, %v168_v15  ;;  %v169_v20 = vadd.f32 %v364_v19, %v36_v14  ;;  %v154_v21 = vpop.f32.mrb[3].mxu0  ;;  %v316_v15 = vld [vmem:[%s501_s4] ss:$0 sm:$0xff] }
  0xf9   :  { %171 = vst.msk [vmem:[#allocation2] sm:$0xff] %vm28_vm0, %v166_v18  ;;  %v167_v22 = vadd.f32 %v154_v21, %v34_v17  ;;  %v317_v17 = vld [vmem:[%s502_s5] ss:$0 sm:$0xff] }
  0xfa   :  { %174 = vst.msk [vmem:[#allocation2 + $0x18] sm:$0xff] %vm28_vm0, %v169_v20 }
  0xfb   :  { %172 = vst.msk [vmem:[#allocation2 + $0x8] sm:$0xff] %vm28_vm0, %v167_v22 }
  0xff   :  { %v180_v27 = vld [vmem:[#allocation2 + $0x10] sm:$0xff] }
 0x100   :  { %v191_v29 = vadd.f32 %v315_v25, %v180_v27  ;;  %v178_v30 = vld [vmem:[#allocation2] sm:$0xff] }
 0x101   :  { %v189_v32 = vadd.f32 %v315_v25, %v178_v30  ;;  %v181_v33 = vld [vmem:[#allocation2 + $0x18] sm:$0xff] }
 0x102   :  { %v203_v35 = vadd.f32 %v332_v26, %v191_v29  ;;  %v192_v36 = vadd.f32 %v315_v25, %v181_v33  ;;  %v179_v37 = vld [vmem:[#allocation2 + $0x8] sm:$0xff] }
 0x103   :  { %v201_v38 = vadd.f32 %v328_v28, %v189_v32  ;;  %v190_v39 = vadd.f32 %v315_v25, %v179_v37 }
 0x104   :  { %v211_v40 = vsel %vm28_vm0, %v203_v35, 0.0  ;;  %v204_v41 = vadd.f32 %v333_v31, %v192_v36 }
 0x105   :  { %212 = vadd.xlane.f32.xlu1 %v211_v40  ;;  %v205_v42 = vsel %vm28_vm0, %v201_v38, 0.0  ;;  %v202_v43 = vadd.f32 %v329_v34, %v190_v39 }
 0x106   :  { %206 = vadd.xlane.f32.xlu0 %v205_v42  ;;  %v214_v44 = vsel %vm28_vm0, %v204_v41, 0.0 }
 0x107   :  { %v208_v45 = vsel %vm28_vm0, %v202_v43, 0.0 }
 0x109   :  { %215 = vadd.xlane.f32.xlu1 %v214_v44 }
 0x10a   :  { %209 = vadd.xlane.f32.xlu0 %v208_v45 }
 0x192   :  { %v213_v46 = vpop.xlane.xlu1 %212 }
 0x193   :  { %v220_v47 = vmul.f32 0.015625, %v213_v46  ;;  %v207_v48 = vpop.xlane.xlu0 %206 }
 0x194   :  { %v218_v49 = vmul.f32 0.015625, %v207_v48 }
 0x195   :  { %v224_v50 = vsub.f32 %v203_v35, %v220_v47 }
 0x196   :  { %v222_v51 = vsub.f32 %v201_v38, %v218_v49  ;;  %v216_v52 = vpop.xlane.xlu1 %215 }
 0x197   :  { %v221_v53 = vmul.f32 0.015625, %v216_v52  ;;  %v210_v54 = vpop.xlane.xlu0 %209  ;;  %v228_v60 = vmul.f32 %v224_v50, %v224_v50 }
 0x198   :  { %v219_v55 = vmul.f32 0.015625, %v210_v54  ;;  %v226_v56 = vmul.f32 %v222_v51, %v222_v51 }
 0x199   :  { %v225_v57 = vsub.f32 %v204_v41, %v221_v53  ;;  %v236_v62 = vsel %vm28_vm0, %v228_v60, 0.0 }
 0x19a   :  { %v223_v58 = vsub.f32 %v202_v43, %v219_v55  ;;  %v230_v59 = vsel %vm28_vm0, %v226_v56, 0.0 }
 0x19b   :  { %231 = vadd.xlane.f32.xlu0 %v230_v59  ;;  %v229_v0 = vmul.f32 %v225_v57, %v225_v57 }
 0x19c   :  { %v227_v61 = vmul.f32 %v223_v58, %v223_v58 }
 0x19d   :  { %v239_v1 = vsel %vm28_vm0, %v229_v0, 0.0 }
 0x19e   :  { %v233_v63 = vsel %vm28_vm0, %v227_v61, 0.0 }
 0x19f   :  { %237 = vadd.xlane.f32.xlu0 %v236_v62  ;;  %234 = vadd.xlane.f32.xlu1 %v233_v63 }
 0x1a3   :  { %240 = vadd.xlane.f32.xlu1 %v239_v1 }
 0x228   :  { %v232_v2 = vpop.xlane.xlu0 %231 }
 0x229   :  { %v242_v3 = vmul.f32 0.015625, %v232_v2 }
 0x22b   :  { %v246_v4 = vadd.f32 1e-05, %v242_v3 }
 0x22c   :  { %v235_v5 = vpop.xlane.xlu1 %234  ;;  %v238_v6 = vpop.xlane.xlu0 %237 }
 0x22d   :  { %376 = vrsqrt.f32 %v246_v4  ;;  %v243_v7 = vmul.f32 0.015625, %v235_v5  ;;  %v244_v8 = vmul.f32 0.015625, %v238_v6 }
 0x22f   :  { %v247_v9 = vadd.f32 1e-05, %v243_v7  ;;  %v248_v10 = vadd.f32 1e-05, %v244_v8 }
 0x230   :  { %v241_v11 = vpop.xlane.xlu1 %240 }
 0x231   :  { %378 = vrsqrt.f32 %v247_v9  ;;  %v245_v12 = vmul.f32 0.015625, %v241_v11 }
 0x232   :  { %380 = vrsqrt.f32 %v248_v10 }
 0x233   :  { %v249_v13 = vadd.f32 1e-05, %v245_v12 }
 0x235   :  { %382 = vrsqrt.f32 %v249_v13 }
 0x237   :  { %v377_v14 = vpop.eup %376 }
 0x238   :  { %v254_v16 = vmul.f32 %v377_v14, %v222_v51 }
 0x23a   :  { %v265_v18 = vmul.f32 %v316_v15, %v254_v16 }
 0x23b   :  { %v379_v19 = vpop.eup %378 }
 0x23c   :  { %v381_v20 = vpop.eup %380  ;;  %v276_v21 = vadd.f32 %v317_v17, %v265_v18  ;;  %v255_v22 = vmul.f32 %v379_v19, %v223_v58 }
 0x23d   :  { %v256_v23 = vmul.f32 %v381_v20, %v224_v50 }
 0x23e   :  { %v322_v24 = vpack.c.bf16 %v276_v21, %v276_v21  ;;  %v266_v25 = vmul.f32 %v316_v15, %v255_v22 }
 0x23f   :  { %v383_v26 = vpop.eup %382  ;;  %v267_v27 = vmul.f32 %v316_v15, %v256_v23 }
 0x240   :  { %297 = vst.msk [vmem:[%s503_s6] sm:$0xf] %vm296_vm1, %v322_v24  ;;  %v277_v28 = vadd.f32 %v317_v17, %v266_v25  ;;  %v257_v29 = vmul.f32 %v383_v26, %v225_v57 }
 0x241   :  { %v278_v30 = vadd.f32 %v317_v17, %v267_v27 }
 0x242   :  { %v323_v31 = vpack.c.bf16 %v277_v28, %v277_v28  ;;  %v268_v32 = vmul.f32 %v316_v15, %v257_v29 }
 0x243   :  { %v324_v33 = vpack.c.bf16 %v278_v30, %v278_v30 }
 0x244   :  { %298 = vst.msk [vmem:[%s503_s6 + $0x4] sm:$0xf] %vm296_vm1, %v323_v31  ;;  %v279_v34 = vadd.f32 %v317_v17, %v268_v32 }
 0x245   :  { %299 = vst.msk [vmem:[%s503_s6 + $0x8] sm:$0xf] %vm296_vm1, %v324_v33 }
 0x246   :  { %v325_v35 = vpack.c.bf16 %v279_v34, %v279_v34 }
 0x248   :  { %300 = vst.msk [vmem:[%s503_s6 + $0xc] sm:$0xf] %vm296_vm1, %v325_v35 }

</bundles_post_ra>
